<compile_context>
chip_gen: v6e
topology: v6e:2x2x1
jax: 0.10.0
libtpu: 0.0.40
codegen_flags: <defaults>
</compile_context>

<pallas_src>
import functools

import jax
import jax.numpy as jnp
import numpy as np
from jax.experimental import pallas as pl
from jax.experimental.pallas import tpu as pltpu

F32_MIN = float(jnp.finfo(jnp.float32).min)
_HIGHEST = jax.lax.Precision.HIGHEST  # used only in the pure-JAX reference


# ----------------------------------------------------------------- linear -----
def _linear_kernel(x_ref, w_ref, b_ref, o_ref):
    # x: (TN, Din), w: (Din, Dout) (pre-transposed in wrapper), b: (1, Dout)
    acc = jnp.dot(x_ref[...], w_ref[...], preferred_element_type=jnp.float32)
    o_ref[...] = (acc + b_ref[...]).astype(o_ref.dtype)


def pallas_linear(x, w_t, b, *, row_tile=512):
    """y = x @ w_t + b.   x: (N, Din), w_t: (Din, Dout), b: (Dout,)."""
    n, din = x.shape
    dout = w_t.shape[1]
    tn = n if n <= row_tile else row_tile
    return pl.pallas_call(
        _linear_kernel,
        out_shape=jax.ShapeDtypeStruct((n, dout), x.dtype),
        grid=(pl.cdiv(n, tn),),
        in_specs=[
            pl.BlockSpec((tn, din), lambda i: (i, 0)),
            pl.BlockSpec((din, dout), lambda i: (0, 0)),
            pl.BlockSpec((1, dout), lambda i: (0, 0)),
        ],
        out_specs=pl.BlockSpec((tn, dout), lambda i: (i, 0)),
        compiler_params=pltpu.CompilerParams(dimension_semantics=("parallel",)),
    )(x, w_t, b.reshape(1, dout))


# ----------------------------------------------------------- score kernel -----
def _score_kernel(q_ref, k_ref, s_ref, pmax_ref):
    # q: (A, Dh), k: (T, Dh) -> s: (A, T).  Contract on dim 1 of both operands so the
    # MXU consumes k directly (no in-kernel transpose / extra VMEM copy).
    s = jax.lax.dot_general(
        q_ref[...], k_ref[...],
        dimension_numbers=(((1,), (1,)), ((), ())),
        preferred_element_type=jnp.float32,
    )
    s_ref[...] = s.astype(s_ref.dtype)
    # Per-(b,h) partial max; the global max (attn_weights.max()) is reduced in JAX glue.
    pmax_ref[...] = jnp.max(jnp.max(s, axis=1, keepdims=True), axis=0, keepdims=True)


# ------------------------------------------------------- fused bi-attention ---
def _bi_attention_kernel(gmax_ref, s_ref, tmask_ref, amask_ref, tv_ref, av_ref,
                         aw_ref, tw_ref, ao_ref, to_ref):
    neg = F32_MIN
    # global-max shift + clamp
    s = s_ref[...].astype(jnp.float32) - gmax_ref[...]          # (A, T) - (1, 1)
    s = jnp.clip(s, -50000.0, 50000.0)
    # text padding fill (True == masked out), broadcast over the audio rows
    s = jnp.where(tmask_ref[...] != 0, neg, s)                  # mask (1, T)

    # ---- audio -> text attention: softmax over T, then @ text values ----
    m_a = jnp.max(s, axis=-1, keepdims=True)
    e_a = jnp.exp(s - m_a)
    aw = e_a / jnp.sum(e_a, axis=-1, keepdims=True)
    aw_ref[...] = aw.astype(aw_ref.dtype)
    ao_ref[...] = jnp.dot(aw, tv_ref[...],
                          preferred_element_type=jnp.float32).astype(ao_ref.dtype)

    # ---- text -> audio attention: the (T, A) layout is itself a module output,
    #      so one in-kernel transpose is unavoidable (single XLU pass per block). ----
    st = s.T                                                    # (T, A)
    st = st - jnp.max(st, axis=-1, keepdims=True)
    st = jnp.clip(st, -50000.0, 50000.0)
    st = jnp.where(amask_ref[...] != 0, neg, st)                # audio mask (1, A)
    m_t = jnp.max(st, axis=-1, keepdims=True)
    e_t = jnp.exp(st - m_t)
    tw = e_t / jnp.sum(e_t, axis=-1, keepdims=True)
    tw_ref[...] = tw.astype(tw_ref.dtype)
    to_ref[...] = jnp.dot(tw, av_ref[...],
                          preferred_element_type=jnp.float32).astype(to_ref.dtype)


# ----------------------------------------------------------------- wrapper ----
def grounded_audio_bi_mha(params, audio_features, text_features,
                          audio_attention_mask=None, text_attention_mask=None,
                          *, num_heads):
    """Forward pass of GroundedAudioBiMultiHeadAttention (inference)."""
    # TODO(synk): training-mode fusion_dropout is not implemented (eval forward only).
    B, A, Dm = audio_features.shape
    _, T, _ = text_features.shape
    E = params["audio_proj_w"].shape[0]          # torch layout: (E, Dm)
    H = num_heads
    Dh = E // H
    scale = Dh ** (-0.5)
    dtype = audio_features.dtype

    audio2d = audio_features.reshape(B * A, Dm)
    text2d = text_features.reshape(B * T, Dm)

    def proj(x2d, w, b):
        # pre-transpose the torch (Dout, Din) weight once (XLA glue) so the Pallas
        # linear kernel contracts without any in-kernel transpose.
        return pallas_linear(x2d, jnp.transpose(w), b)

    def to_heads(x2d, seq_len):
        return x2d.reshape(B, seq_len, H, Dh).transpose(0, 2, 1, 3)   # (B, H, L, Dh)

    q = to_heads(proj(audio2d, params["audio_proj_w"], params["audio_proj_b"]) * scale, A)
    va = to_heads(proj(audio2d, params["values_audio_proj_w"],
                       params["values_audio_proj_b"]), A)
    k = to_heads(proj(text2d, params["text_proj_w"], params["text_proj_b"]), T)
    vt = to_heads(proj(text2d, params["values_text_proj_w"],
                       params["values_text_proj_b"]), T)

    par2 = pltpu.CompilerParams(dimension_semantics=("parallel", "parallel"))

    # ---- pass 1: raw scores + per-(b,h) max (feeds the module's global max) ----
    scores, pmax = pl.pallas_call(
        _score_kernel,
        out_shape=(jax.ShapeDtypeStruct((B, H, A, T), jnp.float32),
                   jax.ShapeDtypeStruct((B, H, 1, 1), jnp.float32)),
        grid=(B, H),
        in_specs=[
            pl.BlockSpec((None, None, A, Dh), lambda b, h: (b, h, 0, 0)),
            pl.BlockSpec((None, None, T, Dh), lambda b, h: (b, h, 0, 0)),
        ],
        out_specs=(
            pl.BlockSpec((None, None, A, T), lambda b, h: (b, h, 0, 0)),
            pl.BlockSpec((None, None, 1, 1), lambda b, h: (b, h, 0, 0)),
        ),
        compiler_params=par2,
    )(q, k)

    gmax = jnp.max(pmax).reshape(1, 1).astype(jnp.float32)

    if text_attention_mask is None:
        tmask = jnp.zeros((B, 1, T), jnp.int32)
    else:
        tmask = text_attention_mask.astype(jnp.int32).reshape(B, 1, T)
    if audio_attention_mask is None:
        amask = jnp.zeros((B, 1, A), jnp.int32)
    else:
        amask = audio_attention_mask.astype(jnp.int32).reshape(B, 1, A)

    # ---- pass 2: fused shift/clamp/mask + bi-directional softmax + both PV matmuls ----
    aw, tw, ao, to = pl.pallas_call(
        _bi_attention_kernel,
        out_shape=(jax.ShapeDtypeStruct((B, H, A, T), dtype),
                   jax.ShapeDtypeStruct((B, H, T, A), dtype),
                   jax.ShapeDtypeStruct((B, H, A, Dh), dtype),
                   jax.ShapeDtypeStruct((B, H, T, Dh), dtype)),
        grid=(B, H),
        in_specs=[
            pl.BlockSpec((1, 1), lambda b, h: (0, 0)),                     # global max
            pl.BlockSpec((None, None, A, T), lambda b, h: (b, h, 0, 0)),   # scores
            pl.BlockSpec((None, 1, T), lambda b, h: (b, 0, 0)),            # text mask
            pl.BlockSpec((None, 1, A), lambda b, h: (b, 0, 0)),            # audio mask
            pl.BlockSpec((None, None, T, Dh), lambda b, h: (b, h, 0, 0)),  # text values
            pl.BlockSpec((None, None, A, Dh), lambda b, h: (b, h, 0, 0)),  # audio values
        ],
        out_specs=(
            pl.BlockSpec((None, None, A, T), lambda b, h: (b, h, 0, 0)),
            pl.BlockSpec((None, None, T, A), lambda b, h: (b, h, 0, 0)),
            pl.BlockSpec((None, None, A, Dh), lambda b, h: (b, h, 0, 0)),
            pl.BlockSpec((None, None, T, Dh), lambda b, h: (b, h, 0, 0)),
        ),
        compiler_params=par2,
    )(gmax, scores, tmask, amask, vt, va)

    def from_heads(x, seq_len):
        return x.transpose(0, 2, 1, 3).reshape(B * seq_len, E)

    audio_out = pallas_linear(from_heads(ao, A),
                              jnp.transpose(params["out_audio_proj_w"]),
                              params["out_audio_proj_b"]).reshape(B, A, Dm)
    text_out = pallas_linear(from_heads(to, T),
                             jnp.transpose(params["out_text_proj_w"]),
                             params["out_text_proj_b"]).reshape(B, T, Dm)

    audio_attn_weights = aw.reshape(B * H, A, T)
    text_attn_weights = tw.reshape(B * H, T, A)
    return (audio_out, audio_attn_weights), (text_out, text_attn_weights)


# --------------------------------------------------------------- reference ----
def _reference(params, audio, text, amask, tmask, num_heads):
    B, A, Dm = audio.shape
    T = text.shape[1]
    E = params["audio_proj_w"].shape[0]
    H = num_heads
    Dh = E // H
    scale = Dh ** (-0.5)
    neg = F32_MIN

    def lin(x, w, b):
        return jnp.einsum("...i,oi->...o", x, w, precision=_HIGHEST) + b

    def shape(x, seq_len):
        return x.reshape(B, seq_len, H, Dh).transpose(0, 2, 1, 3).reshape(B * H, seq_len, Dh)

    q = shape(lin(audio, params["audio_proj_w"], params["audio_proj_b"]) * scale, A)
    va = shape(lin(audio, params["values_audio_proj_w"], params["values_audio_proj_b"]), A)
    k = shape(lin(text, params["text_proj_w"], params["text_proj_b"]), T)
    vt = shape(lin(text, params["values_text_proj_w"], params["values_text_proj_b"]), T)

    attn = jnp.einsum("bqd,bkd->bqk", q, k, precision=_HIGHEST)
    attn = attn - jnp.max(attn)
    attn = jnp.clip(attn, -50000.0, 50000.0)
    if tmask is not None:
        tm = jnp.repeat(tmask[:, None, None, :], H, axis=1).reshape(B * H, 1, T)
        attn = jnp.where(tm, neg, attn)
    aw = jax.nn.softmax(attn, axis=-1)
    at = jnp.swapaxes(attn, 1, 2)
    tw = at - jnp.max(at, axis=-1, keepdims=True)
    tw = jnp.clip(tw, -50000.0, 50000.0)
    if amask is not None:
        am = jnp.repeat(amask[:, None, None, :], H, axis=1).reshape(B * H, 1, A)
        tw = jnp.where(am, neg, tw)
    tw = jax.nn.softmax(tw, axis=-1)
    ao = jnp.einsum("bqk,bkd->bqd", aw, vt, precision=_HIGHEST)
    to = jnp.einsum("bqk,bkd->bqd", tw, va, precision=_HIGHEST)

    def unshape(x, seq_len):
        return x.reshape(B, H, seq_len, Dh).transpose(0, 2, 1, 3).reshape(B, seq_len, E)

    ao = lin(unshape(ao, A), params["out_audio_proj_w"], params["out_audio_proj_b"])
    to = lin(unshape(to, T), params["out_text_proj_w"], params["out_text_proj_b"])
    return (ao, aw), (to, tw)


if __name__ == "__main__":
    # Small config consistent with the module:
    #   d_model=64, encoder_ffn_dim=256 -> embed_dim=128,
    #   encoder_attention_heads=8 -> num_heads=4, head_dim=32, fusion_dropout=0.0 (eval)
    D_MODEL, EMBED_DIM, NUM_HEADS = 64, 128, 4
    B, A_LEN, T_LEN = 2, 32, 16

    key = jax.random.PRNGKey(0)
    keys = jax.random.split(key, 16)

    def w(k, shp, s=0.05):
        return (s * jax.random.normal(k, shp)).astype(jnp.float32)

    params = {
        "audio_proj_w": w(keys[0], (EMBED_DIM, D_MODEL)),
        "audio_proj_b": w(keys[1], (EMBED_DIM,)),
        "text_proj_w": w(keys[2], (EMBED_DIM, D_MODEL)),
        "text_proj_b": w(keys[3], (EMBED_DIM,)),
        "values_audio_proj_w": w(keys[4], (EMBED_DIM, D_MODEL)),
        "values_audio_proj_b": w(keys[5], (EMBED_DIM,)),
        "values_text_proj_w": w(keys[6], (EMBED_DIM, D_MODEL)),
        "values_text_proj_b": w(keys[7], (EMBED_DIM,)),
        "out_audio_proj_w": w(keys[8], (D_MODEL, EMBED_DIM)),
        "out_audio_proj_b": w(keys[9], (D_MODEL,)),
        "out_text_proj_w": w(keys[10], (D_MODEL, EMBED_DIM)),
        "out_text_proj_b": w(keys[11], (D_MODEL,)),
    }

    audio = jax.random.normal(keys[12], (B, A_LEN, D_MODEL), dtype=jnp.float32)
    text = jax.random.normal(keys[13], (B, T_LEN, D_MODEL), dtype=jnp.float32)
    # True == padding position (masked_fill_ semantics of the module).
    audio_mask = jax.random.bernoulli(keys[14], 0.25, (B, A_LEN))
    text_mask = jax.random.bernoulli(keys[15], 0.25, (B, T_LEN))

    fwd = jax.jit(functools.partial(grounded_audio_bi_mha, num_heads=NUM_HEADS))
    (audio_out, audio_w_out), (text_out, text_w_out) = jax.block_until_ready(
        fwd(params, audio, text, audio_mask, text_mask))

    (r_ao, r_aw), (r_to, r_tw) = _reference(params, audio, text,
                                            audio_mask, text_mask, NUM_HEADS)

    # tolerance allows for MXU f32 contraction / accumulation-order differences
    np.testing.assert_allclose(np.asarray(audio_w_out), np.asarray(r_aw), rtol=5e-3, atol=5e-4)
    np.testing.assert_allclose(np.asarray(text_w_out), np.asarray(r_tw), rtol=5e-3, atol=5e-4)
    np.testing.assert_allclose(np.asarray(audio_out), np.asarray(r_ao), rtol=5e-3, atol=5e-4)
    np.testing.assert_allclose(np.asarray(text_out), np.asarray(r_to), rtol=5e-3, atol=5e-4)

    print("KERNEL_OK")
</pallas_src>

<mosaic_0001>
module attributes {stable_mosaic.version = 11 : i64} {
  func.func @_linear_kernel(%arg0: i32, %arg1: memref<64x64xf32, #tpu.memory_space<vmem>>, %arg2: memref<64x128xf32, #tpu.memory_space<vmem>>, %arg3: memref<1x128xf32, #tpu.memory_space<vmem>>, %arg4: memref<64x128xf32, #tpu.memory_space<vmem>>) attributes {dimension_semantics = [#tpu.dimension_semantics<parallel>], iteration_bounds = array<i64: 1>, scalar_prefetch = 0 : i64, scratch_operands = 0 : i64, tpu.core_type = #tpu.core_type<tc>, window_params = [{transform_indices = @transform_0, window_bounds = array<i64: 64, 64>}, {pipeline_mode = #tpu.pipeline_mode<synchronous>, transform_indices = @transform_1, window_bounds = array<i64: 64, 128>}, {pipeline_mode = #tpu.pipeline_mode<synchronous>, transform_indices = @transform_2, window_bounds = array<i64: 1, 128>}, {transform_indices = @transform_3, window_bounds = array<i64: 64, 128>}]} {
    %c0 = arith.constant 0 : index
    %c0_0 = arith.constant 0 : index
    %0 = vector.load %arg1[%c0, %c0_0] : memref<64x64xf32, #tpu.memory_space<vmem>>, vector<64x64xf32>
    %c0_1 = arith.constant 0 : index
    %c0_2 = arith.constant 0 : index
    %1 = vector.load %arg2[%c0_1, %c0_2] : memref<64x128xf32, #tpu.memory_space<vmem>>, vector<64x128xf32>
    %cst = arith.constant dense<0.000000e+00> : vector<64x128xf32>
    %2 = tpu.matmul %0, %1, %cst {dimension_numbers = #tpu.dot_dimension_numbers<[1], [0], [0], [1], [0, 0, 1, 1], [], []>} : vector<64x64xf32>, vector<64x128xf32>, vector<64x128xf32> -> vector<64x128xf32>
    %c0_3 = arith.constant 0 : index
    %c0_4 = arith.constant 0 : index
    %3 = vector.load %arg3[%c0_3, %c0_4] : memref<1x128xf32, #tpu.memory_space<vmem>>, vector<1x128xf32>
    %4 = vector.broadcast %3 : vector<1x128xf32> to vector<64x128xf32>
    %5 = arith.addf %2, %4 : vector<64x128xf32>
    %c0_5 = arith.constant 0 : index
    %c0_6 = arith.constant 0 : index
    %6 = vector.load %arg4[%c0_5, %c0_6] : memref<64x128xf32, #tpu.memory_space<vmem>>, vector<64x128xf32>
    tpu.vector_store %arg4[%c0_5, %c0_6], %5 {strides = array<i32>} : memref<64x128xf32, #tpu.memory_space<vmem>>, vector<64x128xf32>,
    return
  }
  func.func @transform_0(%arg0: i32) -> (i32, i32) {
    %c0_i32 = arith.constant 0 : i32
    %c0_i32_0 = arith.constant 0 : i32
    return %arg0, %c0_i32 : i32, i32
  }
  func.func @transform_1(%arg0: i32) -> (i32, i32) {
    %c0_i32 = arith.constant 0 : i32
    %c0_i32_0 = arith.constant 0 : i32
    %c0_i32_1 = arith.constant 0 : i32
    return %c0_i32, %c0_i32_0 : i32, i32
  }
  func.func @transform_2(%arg0: i32) -> (i32, i32) {
    %c0_i32 = arith.constant 0 : i32
    %c0_i32_0 = arith.constant 0 : i32
    %c0_i32_1 = arith.constant 0 : i32
    return %c0_i32, %c0_i32_0 : i32, i32
  }
  func.func @transform_3(%arg0: i32) -> (i32, i32) {
    %c0_i32 = arith.constant 0 : i32
    %c0_i32_0 = arith.constant 0 : i32
    return %arg0, %c0_i32 : i32, i32
  }
}

module attributes {stable_mosaic.version = 11 : i64} {
  func.func @_linear_kernel(%arg0: i32, %arg1: memref<32x64xf32, #tpu.memory_space<vmem>>, %arg2: memref<64x128xf32, #tpu.memory_space<vmem>>, %arg3: memref<1x128xf32, #tpu.memory_space<vmem>>, %arg4: memref<32x128xf32, #tpu.memory_space<vmem>>) attributes {dimension_semantics = [#tpu.dimension_semantics<parallel>], iteration_bounds = array<i64: 1>, scalar_prefetch = 0 : i64, scratch_operands = 0 : i64, tpu.core_type = #tpu.core_type<tc>, window_params = [{transform_indices = @transform_0, window_bounds = array<i64: 32, 64>}, {pipeline_mode = #tpu.pipeline_mode<synchronous>, transform_indices = @transform_1, window_bounds = array<i64: 64, 128>}, {pipeline_mode = #tpu.pipeline_mode<synchronous>, transform_indices = @transform_2, window_bounds = array<i64: 1, 128>}, {transform_indices = @transform_3, window_bounds = array<i64: 32, 128>}]} {
    %c0 = arith.constant 0 : index
    %c0_0 = arith.constant 0 : index
    %0 = vector.load %arg1[%c0, %c0_0] : memref<32x64xf32, #tpu.memory_space<vmem>>, vector<32x64xf32>
    %c0_1 = arith.constant 0 : index
    %c0_2 = arith.constant 0 : index
    %1 = vector.load %arg2[%c0_1, %c0_2] : memref<64x128xf32, #tpu.memory_space<vmem>>, vector<64x128xf32>
    %cst = arith.constant dense<0.000000e+00> : vector<32x128xf32>
    %2 = tpu.matmul %0, %1, %cst {dimension_numbers = #tpu.dot_dimension_numbers<[1], [0], [0], [1], [0, 0, 1, 1], [], []>} : vector<32x64xf32>, vector<64x128xf32>, vector<32x128xf32> -> vector<32x128xf32>
    %c0_3 = arith.constant 0 : index
    %c0_4 = arith.constant 0 : index
    %3 = vector.load %arg3[%c0_3, %c0_4] : memref<1x128xf32, #tpu.memory_space<vmem>>, vector<1x128xf32>
    %4 = vector.broadcast %3 : vector<1x128xf32> to vector<32x128xf32>
    %5 = arith.addf %2, %4 : vector<32x128xf32>
    %c0_5 = arith.constant 0 : index
    %c0_6 = arith.constant 0 : index
    %6 = vector.load %arg4[%c0_5, %c0_6] : memref<32x128xf32, #tpu.memory_space<vmem>>, vector<32x128xf32>
    tpu.vector_store %arg4[%c0_5, %c0_6], %5 {strides = array<i32>} : memref<32x128xf32, #tpu.memory_space<vmem>>, vector<32x128xf32>,
    return
  }
  func.func @transform_0(%arg0: i32) -> (i32, i32) {
    %c0_i32 = arith.constant 0 : i32
    %c0_i32_0 = arith.constant 0 : i32
    return %arg0, %c0_i32 : i32, i32
  }
  func.func @transform_1(%arg0: i32) -> (i32, i32) {
    %c0_i32 = arith.constant 0 : i32
    %c0_i32_0 = arith.constant 0 : i32
    %c0_i32_1 = arith.constant 0 : i32
    return %c0_i32, %c0_i32_0 : i32, i32
  }
  func.func @transform_2(%arg0: i32) -> (i32, i32) {
    %c0_i32 = arith.constant 0 : i32
    %c0_i32_0 = arith.constant 0 : i32
    %c0_i32_1 = arith.constant 0 : i32
    return %c0_i32, %c0_i32_0 : i32, i32
  }
  func.func @transform_3(%arg0: i32) -> (i32, i32) {
    %c0_i32 = arith.constant 0 : i32
    %c0_i32_0 = arith.constant 0 : i32
    return %arg0, %c0_i32 : i32, i32
  }
}

module attributes {stable_mosaic.version = 11 : i64} {
  func.func @_score_kernel(%arg0: i32, %arg1: i32, %arg2: memref<1x1x32x32xf32, #tpu.memory_space<vmem>>, %arg3: memref<1x1x16x32xf32, #tpu.memory_space<vmem>>, %arg4: memref<1x1x32x16xf32, #tpu.memory_space<vmem>>, %arg5: memref<1x1x1x1xf32, #tpu.memory_space<vmem>>) attributes {dimension_semantics = [#tpu.dimension_semantics<parallel>, #tpu.dimension_semantics<parallel>], iteration_bounds = array<i64: 2, 4>, scalar_prefetch = 0 : i64, scratch_operands = 0 : i64, tpu.core_type = #tpu.core_type<tc>, window_params = [{transform_indices = @transform_0, window_bounds = array<i64: 1, 1, 32, 32>}, {transform_indices = @transform_1, window_bounds = array<i64: 1, 1, 16, 32>}, {transform_indices = @transform_2, window_bounds = array<i64: 1, 1, 32, 16>}, {transform_indices = @transform_3, window_bounds = array<i64: 1, 1, 1, 1>}]} {
    %c0 = arith.constant 0 : index
    %c0_0 = arith.constant 0 : index
    %c0_1 = arith.constant 0 : index
    %c0_2 = arith.constant 0 : index
    %0 = vector.load %arg2[%c0, %c0_0, %c0_1, %c0_2] : memref<1x1x32x32xf32, #tpu.memory_space<vmem>>, vector<1x1x32x32xf32>
    %1 = vector.shape_cast %0 : vector<1x1x32x32xf32> to vector<32x32xf32>
    %c0_3 = arith.constant 0 : index
    %c0_4 = arith.constant 0 : index
    %c0_5 = arith.constant 0 : index
    %c0_6 = arith.constant 0 : index
    %2 = vector.load %arg3[%c0_3, %c0_4, %c0_5, %c0_6] : memref<1x1x16x32xf32, #tpu.memory_space<vmem>>, vector<1x1x16x32xf32>
    %3 = vector.shape_cast %2 : vector<1x1x16x32xf32> to vector<16x32xf32>
    %cst = arith.constant dense<0.000000e+00> : vector<32x16xf32>
    %4 = tpu.matmul %1, %3, %cst {dimension_numbers = #tpu.dot_dimension_numbers<[1], [1], [0], [0], [0, 0, 1, 0], [], []>} : vector<32x32xf32>, vector<16x32xf32>, vector<32x16xf32> -> vector<32x16xf32>
    %c0_7 = arith.constant 0 : index
    %c0_8 = arith.constant 0 : index
    %c0_9 = arith.constant 0 : index
    %c0_10 = arith.constant 0 : index
    %5 = vector.load %arg4[%c0_7, %c0_8, %c0_9, %c0_10] : memref<1x1x32x16xf32, #tpu.memory_space<vmem>>, vector<1x1x32x16xf32>
    %6 = vector.shape_cast %5 : vector<1x1x32x16xf32> to vector<32x16xf32>
    %7 = vector.shape_cast %4 : vector<32x16xf32> to vector<1x1x32x16xf32>
    tpu.vector_store %arg4[%c0_7, %c0_8, %c0_9, %c0_10], %7 {strides = array<i32>} : memref<1x1x32x16xf32, #tpu.memory_space<vmem>>, vector<1x1x32x16xf32>,
    %cst_11 = arith.constant dense<0xFF800000> : vector<32xf32>
    %8 = vector.multi_reduction <maximumf>, %4, %cst_11 [1] : vector<32x16xf32> to vector<32xf32>
    %9 = vector.shape_cast %8 : vector<32xf32> to vector<32x1xf32>
    %cst_12 = arith.constant dense<0xFF800000> : vector<1xf32>
    %10 = vector.multi_reduction <maximumf>, %9, %cst_12 [0] : vector<32x1xf32> to vector<1xf32>
    %11 = vector.shape_cast %10 : vector<1xf32> to vector<1x1xf32>
    %c0_13 = arith.constant 0 : index
    %c0_14 = arith.constant 0 : index
    %c0_15 = arith.constant 0 : index
    %c0_16 = arith.constant 0 : index
    %12 = vector.load %arg5[%c0_13, %c0_14, %c0_15, %c0_16] : memref<1x1x1x1xf32, #tpu.memory_space<vmem>>, vector<1x1x1x1xf32>
    %13 = vector.shape_cast %12 : vector<1x1x1x1xf32> to vector<1x1xf32>
    %14 = vector.shape_cast %11 : vector<1x1xf32> to vector<1x1x1x1xf32>
    tpu.vector_store %arg5[%c0_13, %c0_14, %c0_15, %c0_16], %14 {strides = array<i32>} : memref<1x1x1x1xf32, #tpu.memory_space<vmem>>, vector<1x1x1x1xf32>,
    return
  }
  func.func @transform_0(%arg0: i32, %arg1: i32) -> (i32, i32, i32, i32) {
    %c0_i32 = arith.constant 0 : i32
    %c0_i32_0 = arith.constant 0 : i32
    %c0_i32_1 = arith.constant 0 : i32
    return %arg0, %arg1, %c0_i32, %c0_i32_0 : i32, i32, i32, i32
  }
  func.func @transform_1(%arg0: i32, %arg1: i32) -> (i32, i32, i32, i32) {
    %c0_i32 = arith.constant 0 : i32
    %c0_i32_0 = arith.constant 0 : i32
    %c0_i32_1 = arith.constant 0 : i32
    return %arg0, %arg1, %c0_i32, %c0_i32_0 : i32, i32, i32, i32
  }
  func.func @transform_2(%arg0: i32, %arg1: i32) -> (i32, i32, i32, i32) {
    %c0_i32 = arith.constant 0 : i32
    %c0_i32_0 = arith.constant 0 : i32
    %c0_i32_1 = arith.constant 0 : i32
    return %arg0, %arg1, %c0_i32, %c0_i32_0 : i32, i32, i32, i32
  }
  func.func @transform_3(%arg0: i32, %arg1: i32) -> (i32, i32, i32, i32) {
    %c0_i32 = arith.constant 0 : i32
    %c0_i32_0 = arith.constant 0 : i32
    %c0_i32_1 = arith.constant 0 : i32
    return %arg0, %arg1, %c0_i32, %c0_i32_0 : i32, i32, i32, i32
  }
}

module attributes {stable_mosaic.version = 11 : i64} {
  func.func @_linear_kernel(%arg0: i32, %arg1: memref<64x64xf32, #tpu.memory_space<vmem>>, %arg2: memref<64x128xf32, #tpu.memory_space<vmem>>, %arg3: memref<1x128xf32, #tpu.memory_space<vmem>>, %arg4: memref<64x128xf32, #tpu.memory_space<vmem>>) attributes {dimension_semantics = [#tpu.dimension_semantics<parallel>], iteration_bounds = array<i64: 1>, scalar_prefetch = 0 : i64, scratch_operands = 0 : i64, tpu.core_type = #tpu.core_type<tc>, window_params = [{transform_indices = @transform_0, window_bounds = array<i64: 64, 64>}, {pipeline_mode = #tpu.pipeline_mode<synchronous>, transform_indices = @transform_1, window_bounds = array<i64: 64, 128>}, {pipeline_mode = #tpu.pipeline_mode<synchronous>, transform_indices = @transform_2, window_bounds = array<i64: 1, 128>}, {transform_indices = @transform_3, window_bounds = array<i64: 64, 128>}]} {
    %c0 = arith.constant 0 : index
    %c0_0 = arith.constant 0 : index
    %0 = vector.load %arg1[%c0, %c0_0] : memref<64x64xf32, #tpu.memory_space<vmem>>, vector<64x64xf32>
    %c0_1 = arith.constant 0 : index
    %c0_2 = arith.constant 0 : index
    %1 = vector.load %arg2[%c0_1, %c0_2] : memref<64x128xf32, #tpu.memory_space<vmem>>, vector<64x128xf32>
    %cst = arith.constant dense<0.000000e+00> : vector<64x128xf32>
    %2 = tpu.matmul %0, %1, %cst {dimension_numbers = #tpu.dot_dimension_numbers<[1], [0], [0], [1], [0, 0, 1, 1], [], []>} : vector<64x64xf32>, vector<64x128xf32>, vector<64x128xf32> -> vector<64x128xf32>
    %c0_3 = arith.constant 0 : index
    %c0_4 = arith.constant 0 : index
    %3 = vector.load %arg3[%c0_3, %c0_4] : memref<1x128xf32, #tpu.memory_space<vmem>>, vector<1x128xf32>
    %4 = vector.broadcast %3 : vector<1x128xf32> to vector<64x128xf32>
    %5 = arith.addf %2, %4 : vector<64x128xf32>
    %c0_5 = arith.constant 0 : index
    %c0_6 = arith.constant 0 : index
    %6 = vector.load %arg4[%c0_5, %c0_6] : memref<64x128xf32, #tpu.memory_space<vmem>>, vector<64x128xf32>
    tpu.vector_store %arg4[%c0_5, %c0_6], %5 {strides = array<i32>} : memref<64x128xf32, #tpu.memory_space<vmem>>, vector<64x128xf32>,
    return
  }
  func.func @transform_0(%arg0: i32) -> (i32, i32) {
    %c0_i32 = arith.constant 0 : i32
    %c0_i32_0 = arith.constant 0 : i32
    return %arg0, %c0_i32 : i32, i32
  }
  func.func @transform_1(%arg0: i32) -> (i32, i32) {
    %c0_i32 = arith.constant 0 : i32
    %c0_i32_0 = arith.constant 0 : i32
    %c0_i32_1 = arith.constant 0 : i32
    return %c0_i32, %c0_i32_0 : i32, i32
  }
  func.func @transform_2(%arg0: i32) -> (i32, i32) {
    %c0_i32 = arith.constant 0 : i32
    %c0_i32_0 = arith.constant 0 : i32
    %c0_i32_1 = arith.constant 0 : i32
    return %c0_i32, %c0_i32_0 : i32, i32
  }
  func.func @transform_3(%arg0: i32) -> (i32, i32) {
    %c0_i32 = arith.constant 0 : i32
    %c0_i32_0 = arith.constant 0 : i32
    return %arg0, %c0_i32 : i32, i32
  }
}

module attributes {stable_mosaic.version = 11 : i64} {
  func.func @_bi_attention_kernel(%arg0: i32, %arg1: i32, %arg2: memref<1x1xf32, #tpu.memory_space<vmem>>, %arg3: memref<1x1x32x16xf32, #tpu.memory_space<vmem>>, %arg4: memref<1x1x16xi32, #tpu.memory_space<vmem>>, %arg5: memref<1x1x32xi32, #tpu.memory_space<vmem>>, %arg6: memref<1x1x16x32xf32, #tpu.memory_space<vmem>>, %arg7: memref<1x1x32x32xf32, #tpu.memory_space<vmem>>, %arg8: memref<1x1x32x16xf32, #tpu.memory_space<vmem>>, %arg9: memref<1x1x16x32xf32, #tpu.memory_space<vmem>>, %arg10: memref<1x1x32x32xf32, #tpu.memory_space<vmem>>, %arg11: memref<1x1x16x32xf32, #tpu.memory_space<vmem>>) attributes {dimension_semantics = [#tpu.dimension_semantics<parallel>, #tpu.dimension_semantics<parallel>], iteration_bounds = array<i64: 2, 4>, scalar_prefetch = 0 : i64, scratch_operands = 0 : i64, tpu.core_type = #tpu.core_type<tc>, window_params = [{pipeline_mode = #tpu.pipeline_mode<synchronous>, transform_indices = @transform_0, window_bounds = array<i64: 1, 1>}, {transform_indices = @transform_1, window_bounds = array<i64: 1, 1, 32, 16>}, {transform_indices = @transform_2, window_bounds = array<i64: 1, 1, 16>}, {transform_indices = @transform_3, window_bounds = array<i64: 1, 1, 32>}, {transform_indices = @transform_4, window_bounds = array<i64: 1, 1, 16, 32>}, {transform_indices = @transform_5, window_bounds = array<i64: 1, 1, 32, 32>}, {transform_indices = @transform_6, window_bounds = array<i64: 1, 1, 32, 16>}, {transform_indices = @transform_7, window_bounds = array<i64: 1, 1, 16, 32>}, {transform_indices = @transform_8, window_bounds = array<i64: 1, 1, 32, 32>}, {transform_indices = @transform_9, window_bounds = array<i64: 1, 1, 16, 32>}]} {
    %c0 = arith.constant 0 : index
    %c0_0 = arith.constant 0 : index
    %c0_1 = arith.constant 0 : index
    %c0_2 = arith.constant 0 : index
    %0 = vector.load %arg3[%c0, %c0_0, %c0_1, %c0_2] : memref<1x1x32x16xf32, #tpu.memory_space<vmem>>, vector<1x1x32x16xf32>
    %1 = vector.shape_cast %0 : vector<1x1x32x16xf32> to vector<32x16xf32>
    %c0_3 = arith.constant 0 : index
    %c0_4 = arith.constant 0 : index
    %2 = vector.load %arg2[%c0_3, %c0_4] : memref<1x1xf32, #tpu.memory_space<vmem>>, vector<1x1xf32>
    %3 = vector.broadcast %2 : vector<1x1xf32> to vector<32x16xf32>
    %4 = arith.subf %1, %3 : vector<32x16xf32>
    %cst = arith.constant -5.000000e+04 : f32
    %cst_5 = arith.constant 5.000000e+04 : f32
    %5 = vector.broadcast %cst : f32 to vector<32x16xf32>
    %6 = arith.maximumf %5, %4 : vector<32x16xf32>
    %7 = vector.broadcast %cst_5 : f32 to vector<32x16xf32>
    %8 = arith.minimumf %7, %6 : vector<32x16xf32>
    %c0_6 = arith.constant 0 : index
    %c0_7 = arith.constant 0 : index
    %c0_8 = arith.constant 0 : index
    %9 = vector.load %arg4[%c0_6, %c0_7, %c0_8] : memref<1x1x16xi32, #tpu.memory_space<vmem>>, vector<1x1x16xi32>
    %10 = vector.shape_cast %9 : vector<1x1x16xi32> to vector<1x16xi32>
    %c0_i32 = arith.constant 0 : i32
    %11 = vector.broadcast %c0_i32 : i32 to vector<1x16xi32>
    %12 = arith.cmpi ne, %10, %11 : vector<1x16xi32>
    %cst_9 = arith.constant -3.40282347E+38 : f32
    %13 = vector.shape_cast %12 : vector<1x16xi1> to vector<1x16xi1>
    %14 = vector.broadcast %13 : vector<1x16xi1> to vector<32x16xi1>
    %15 = vector.broadcast %cst_9 : f32 to vector<32x16xf32>
    %16 = arith.select %14, %15, %8 : vector<32x16xi1>, vector<32x16xf32>
    %cst_10 = arith.constant dense<0xFF800000> : vector<32xf32>
    %17 = vector.multi_reduction <maximumf>, %16, %cst_10 [1] : vector<32x16xf32> to vector<32xf32>
    %18 = vector.shape_cast %17 : vector<32xf32> to vector<32x1xf32>
    %19 = vector.broadcast %18 : vector<32x1xf32> to vector<32x16xf32>
    %20 = arith.subf %16, %19 : vector<32x16xf32>
    %21 = math.exp %20 : vector<32x16xf32>
    %cst_11 = arith.constant dense<0.000000e+00> : vector<32xf32>
    %22 = vector.multi_reduction <add>, %21, %cst_11 [1] : vector<32x16xf32> to vector<32xf32>
    %23 = vector.shape_cast %22 : vector<32xf32> to vector<32x1xf32>
    %24 = vector.broadcast %23 : vector<32x1xf32> to vector<32x16xf32>
    %25 = arith.divf %21, %24 : vector<32x16xf32>
    %c0_12 = arith.constant 0 : index
    %c0_13 = arith.constant 0 : index
    %c0_14 = arith.constant 0 : index
    %c0_15 = arith.constant 0 : index
    %26 = vector.load %arg8[%c0_12, %c0_13, %c0_14, %c0_15] : memref<1x1x32x16xf32, #tpu.memory_space<vmem>>, vector<1x1x32x16xf32>
    %27 = vector.shape_cast %26 : vector<1x1x32x16xf32> to vector<32x16xf32>
    %28 = vector.shape_cast %25 : vector<32x16xf32> to vector<1x1x32x16xf32>
    tpu.vector_store %arg8[%c0_12, %c0_13, %c0_14, %c0_15], %28 {strides = array<i32>} : memref<1x1x32x16xf32, #tpu.memory_space<vmem>>, vector<1x1x32x16xf32>,
    %c0_16 = arith.constant 0 : index
    %c0_17 = arith.constant 0 : index
    %c0_18 = arith.constant 0 : index
    %c0_19 = arith.constant 0 : index
    %29 = vector.load %arg6[%c0_16, %c0_17, %c0_18, %c0_19] : memref<1x1x16x32xf32, #tpu.memory_space<vmem>>, vector<1x1x16x32xf32>
    %30 = vector.shape_cast %29 : vector<1x1x16x32xf32> to vector<16x32xf32>
    %cst_20 = arith.constant dense<0.000000e+00> : vector<32x32xf32>
    %31 = tpu.matmul %25, %30, %cst_20 {dimension_numbers = #tpu.dot_dimension_numbers<[1], [0], [0], [1], [0, 0, 1, 1], [], []>} : vector<32x16xf32>, vector<16x32xf32>, vector<32x32xf32> -> vector<32x32xf32>
    %c0_21 = arith.constant 0 : index
    %c0_22 = arith.constant 0 : index
    %c0_23 = arith.constant 0 : index
    %c0_24 = arith.constant 0 : index
    %32 = vector.load %arg10[%c0_21, %c0_22, %c0_23, %c0_24] : memref<1x1x32x32xf32, #tpu.memory_space<vmem>>, vector<1x1x32x32xf32>
    %33 = vector.shape_cast %32 : vector<1x1x32x32xf32> to vector<32x32xf32>
    %34 = vector.shape_cast %31 : vector<32x32xf32> to vector<1x1x32x32xf32>
    tpu.vector_store %arg10[%c0_21, %c0_22, %c0_23, %c0_24], %34 {strides = array<i32>} : memref<1x1x32x32xf32, #tpu.memory_space<vmem>>, vector<1x1x32x32xf32>,
    %35 = tpu.transpose %16, [1, 0] : vector<32x16xf32> -> vector<16x32xf32>
    %cst_25 = arith.constant dense<0xFF800000> : vector<16xf32>
    %36 = vector.multi_reduction <maximumf>, %35, %cst_25 [1] : vector<16x32xf32> to vector<16xf32>
    %37 = vector.shape_cast %36 : vector<16xf32> to vector<16x1xf32>
    %38 = vector.broadcast %37 : vector<16x1xf32> to vector<16x32xf32>
    %39 = arith.subf %35, %38 : vector<16x32xf32>
    %cst_26 = arith.constant -5.000000e+04 : f32
    %cst_27 = arith.constant 5.000000e+04 : f32
    %40 = vector.broadcast %cst_26 : f32 to vector<16x32xf32>
    %41 = arith.maximumf %40, %39 : vector<16x32xf32>
    %42 = vector.broadcast %cst_27 : f32 to vector<16x32xf32>
    %43 = arith.minimumf %42, %41 : vector<16x32xf32>
    %c0_28 = arith.constant 0 : index
    %c0_29 = arith.constant 0 : index
    %c0_30 = arith.constant 0 : index
    %44 = vector.load %arg5[%c0_28, %c0_29, %c0_30] : memref<1x1x32xi32, #tpu.memory_space<vmem>>, vector<1x1x32xi32>
    %45 = vector.shape_cast %44 : vector<1x1x32xi32> to vector<1x32xi32>
    %c0_i32_31 = arith.constant 0 : i32
    %46 = vector.broadcast %c0_i32_31 : i32 to vector<1x32xi32>
    %47 = arith.cmpi ne, %45, %46 : vector<1x32xi32>
    %cst_32 = arith.constant -3.40282347E+38 : f32
    %48 = vector.shape_cast %47 : vector<1x32xi1> to vector<1x32xi1>
    %49 = vector.broadcast %48 : vector<1x32xi1> to vector<16x32xi1>
    %50 = vector.broadcast %cst_32 : f32 to vector<16x32xf32>
    %51 = arith.select %49, %50, %43 : vector<16x32xi1>, vector<16x32xf32>
    %cst_33 = arith.constant dense<0xFF800000> : vector<16xf32>
    %52 = vector.multi_reduction <maximumf>, %51, %cst_33 [1] : vector<16x32xf32> to vector<16xf32>
    %53 = vector.shape_cast %52 : vector<16xf32> to vector<16x1xf32>
    %54 = vector.broadcast %53 : vector<16x1xf32> to vector<16x32xf32>
    %55 = arith.subf %51, %54 : vector<16x32xf32>
    %56 = math.exp %55 : vector<16x32xf32>
    %cst_34 = arith.constant dense<0.000000e+00> : vector<16xf32>
    %57 = vector.multi_reduction <add>, %56, %cst_34 [1] : vector<16x32xf32> to vector<16xf32>
    %58 = vector.shape_cast %57 : vector<16xf32> to vector<16x1xf32>
    %59 = vector.broadcast %58 : vector<16x1xf32> to vector<16x32xf32>
    %60 = arith.divf %56, %59 : vector<16x32xf32>
    %c0_35 = arith.constant 0 : index
    %c0_36 = arith.constant 0 : index
    %c0_37 = arith.constant 0 : index
    %c0_38 = arith.constant 0 : index
    %61 = vector.load %arg9[%c0_35, %c0_36, %c0_37, %c0_38] : memref<1x1x16x32xf32, #tpu.memory_space<vmem>>, vector<1x1x16x32xf32>
    %62 = vector.shape_cast %61 : vector<1x1x16x32xf32> to vector<16x32xf32>
    %63 = vector.shape_cast %60 : vector<16x32xf32> to vector<1x1x16x32xf32>
    tpu.vector_store %arg9[%c0_35, %c0_36, %c0_37, %c0_38], %63 {strides = array<i32>} : memref<1x1x16x32xf32, #tpu.memory_space<vmem>>, vector<1x1x16x32xf32>,
    %c0_39 = arith.constant 0 : index
    %c0_40 = arith.constant 0 : index
    %c0_41 = arith.constant 0 : index
    %c0_42 = arith.constant 0 : index
    %64 = vector.load %arg7[%c0_39, %c0_40, %c0_41, %c0_42] : memref<1x1x32x32xf32, #tpu.memory_space<vmem>>, vector<1x1x32x32xf32>
    %65 = vector.shape_cast %64 : vector<1x1x32x32xf32> to vector<32x32xf32>
    %cst_43 = arith.constant dense<0.000000e+00> : vector<16x32xf32>
    %66 = tpu.matmul %60, %65, %cst_43 {dimension_numbers = #tpu.dot_dimension_numbers<[1], [0], [0], [1], [0, 0, 1, 1], [], []>} : vector<16x32xf32>, vector<32x32xf32>, vector<16x32xf32> -> vector<16x32xf32>
    %c0_44 = arith.constant 0 : index
    %c0_45 = arith.constant 0 : index
    %c0_46 = arith.constant 0 : index
    %c0_47 = arith.constant 0 : index
    %67 = vector.load %arg11[%c0_44, %c0_45, %c0_46, %c0_47] : memref<1x1x16x32xf32, #tpu.memory_space<vmem>>, vector<1x1x16x32xf32>
    %68 = vector.shape_cast %67 : vector<1x1x16x32xf32> to vector<16x32xf32>
    %69 = vector.shape_cast %66 : vector<16x32xf32> to vector<1x1x16x32xf32>
    tpu.vector_store %arg11[%c0_44, %c0_45, %c0_46, %c0_47], %69 {strides = array<i32>} : memref<1x1x16x32xf32, #tpu.memory_space<vmem>>, vector<1x1x16x32xf32>,
    return
  }
  func.func @transform_0(%arg0: i32, %arg1: i32) -> (i32, i32) {
    %c0_i32 = arith.constant 0 : i32
    %c0_i32_0 = arith.constant 0 : i32
    %c0_i32_1 = arith.constant 0 : i32
    return %c0_i32, %c0_i32_0 : i32, i32
  }
  func.func @transform_1(%arg0: i32, %arg1: i32) -> (i32, i32, i32, i32) {
    %c0_i32 = arith.constant 0 : i32
    %c0_i32_0 = arith.constant 0 : i32
    %c0_i32_1 = arith.constant 0 : i32
    return %arg0, %arg1, %c0_i32, %c0_i32_0 : i32, i32, i32, i32
  }
  func.func @transform_2(%arg0: i32, %arg1: i32) -> (i32, i32, i32) {
    %c0_i32 = arith.constant 0 : i32
    %c0_i32_0 = arith.constant 0 : i32
    %c0_i32_1 = arith.constant 0 : i32
    return %arg0, %c0_i32, %c0_i32_0 : i32, i32, i32
  }
  func.func @transform_3(%arg0: i32, %arg1: i32) -> (i32, i32, i32) {
    %c0_i32 = arith.constant 0 : i32
    %c0_i32_0 = arith.constant 0 : i32
    %c0_i32_1 = arith.constant 0 : i32
    return %arg0, %c0_i32, %c0_i32_0 : i32, i32, i32
  }
  func.func @transform_4(%arg0: i32, %arg1: i32) -> (i32, i32, i32, i32) {
    %c0_i32 = arith.constant 0 : i32
    %c0_i32_0 = arith.constant 0 : i32
    %c0_i32_1 = arith.constant 0 : i32
    return %arg0, %arg1, %c0_i32, %c0_i32_0 : i32, i32, i32, i32
  }
  func.func @transform_5(%arg0: i32, %arg1: i32) -> (i32, i32, i32, i32) {
    %c0_i32 = arith.constant 0 : i32
    %c0_i32_0 = arith.constant 0 : i32
    %c0_i32_1 = arith.constant 0 : i32
    return %arg0, %arg1, %c0_i32, %c0_i32_0 : i32, i32, i32, i32
  }
  func.func @transform_6(%arg0: i32, %arg1: i32) -> (i32, i32, i32, i32) {
    %c0_i32 = arith.constant 0 : i32
    %c0_i32_0 = arith.constant 0 : i32
    %c0_i32_1 = arith.constant 0 : i32
    return %arg0, %arg1, %c0_i32, %c0_i32_0 : i32, i32, i32, i32
  }
  func.func @transform_7(%arg0: i32, %arg1: i32) -> (i32, i32, i32, i32) {
    %c0_i32 = arith.constant 0 : i32
    %c0_i32_0 = arith.constant 0 : i32
    %c0_i32_1 = arith.constant 0 : i32
    return %arg0, %arg1, %c0_i32, %c0_i32_0 : i32, i32, i32, i32
  }
  func.func @transform_8(%arg0: i32, %arg1: i32) -> (i32, i32, i32, i32) {
    %c0_i32 = arith.constant 0 : i32
    %c0_i32_0 = arith.constant 0 : i32
    %c0_i32_1 = arith.constant 0 : i32
    return %arg0, %arg1, %c0_i32, %c0_i32_0 : i32, i32, i32, i32
  }
  func.func @transform_9(%arg0: i32, %arg1: i32) -> (i32, i32, i32, i32) {
    %c0_i32 = arith.constant 0 : i32
    %c0_i32_0 = arith.constant 0 : i32
    %c0_i32_1 = arith.constant 0 : i32
    return %arg0, %arg1, %c0_i32, %c0_i32_0 : i32, i32, i32, i32
  }
}

module attributes {stable_mosaic.version = 11 : i64} {
  func.func @_linear_kernel(%arg0: i32, %arg1: memref<64x128xf32, #tpu.memory_space<vmem>>, %arg2: memref<128x64xf32, #tpu.memory_space<vmem>>, %arg3: memref<1x64xf32, #tpu.memory_space<vmem>>, %arg4: memref<64x64xf32, #tpu.memory_space<vmem>>) attributes {dimension_semantics = [#tpu.dimension_semantics<parallel>], iteration_bounds = array<i64: 1>, scalar_prefetch = 0 : i64, scratch_operands = 0 : i64, tpu.core_type = #tpu.core_type<tc>, window_params = [{transform_indices = @transform_0, window_bounds = array<i64: 64, 128>}, {pipeline_mode = #tpu.pipeline_mode<synchronous>, transform_indices = @transform_1, window_bounds = array<i64: 128, 64>}, {pipeline_mode = #tpu.pipeline_mode<synchronous>, transform_indices = @transform_2, window_bounds = array<i64: 1, 64>}, {transform_indices = @transform_3, window_bounds = array<i64: 64, 64>}]} {
    %c0 = arith.constant 0 : index
    %c0_0 = arith.constant 0 : index
    %0 = vector.load %arg1[%c0, %c0_0] : memref<64x128xf32, #tpu.memory_space<vmem>>, vector<64x128xf32>
    %c0_1 = arith.constant 0 : index
    %c0_2 = arith.constant 0 : index
    %1 = vector.load %arg2[%c0_1, %c0_2] : memref<128x64xf32, #tpu.memory_space<vmem>>, vector<128x64xf32>
    %cst = arith.constant dense<0.000000e+00> : vector<64x64xf32>
    %2 = tpu.matmul %0, %1, %cst {dimension_numbers = #tpu.dot_dimension_numbers<[1], [0], [0], [1], [0, 0, 1, 1], [], []>} : vector<64x128xf32>, vector<128x64xf32>, vector<64x64xf32> -> vector<64x64xf32>
    %c0_3 = arith.constant 0 : index
    %c0_4 = arith.constant 0 : index
    %3 = vector.load %arg3[%c0_3, %c0_4] : memref<1x64xf32, #tpu.memory_space<vmem>>, vector<1x64xf32>
    %4 = vector.broadcast %3 : vector<1x64xf32> to vector<64x64xf32>
    %5 = arith.addf %2, %4 : vector<64x64xf32>
    %c0_5 = arith.constant 0 : index
    %c0_6 = arith.constant 0 : index
    %6 = vector.load %arg4[%c0_5, %c0_6] : memref<64x64xf32, #tpu.memory_space<vmem>>, vector<64x64xf32>
    tpu.vector_store %arg4[%c0_5, %c0_6], %5 {strides = array<i32>} : memref<64x64xf32, #tpu.memory_space<vmem>>, vector<64x64xf32>,
    return
  }
  func.func @transform_0(%arg0: i32) -> (i32, i32) {
    %c0_i32 = arith.constant 0 : i32
    %c0_i32_0 = arith.constant 0 : i32
    return %arg0, %c0_i32 : i32, i32
  }
  func.func @transform_1(%arg0: i32) -> (i32, i32) {
    %c0_i32 = arith.constant 0 : i32
    %c0_i32_0 = arith.constant 0 : i32
    %c0_i32_1 = arith.constant 0 : i32
    return %c0_i32, %c0_i32_0 : i32, i32
  }
  func.func @transform_2(%arg0: i32) -> (i32, i32) {
    %c0_i32 = arith.constant 0 : i32
    %c0_i32_0 = arith.constant 0 : i32
    %c0_i32_1 = arith.constant 0 : i32
    return %c0_i32, %c0_i32_0 : i32, i32
  }
  func.func @transform_3(%arg0: i32) -> (i32, i32) {
    %c0_i32 = arith.constant 0 : i32
    %c0_i32_0 = arith.constant 0 : i32
    return %arg0, %c0_i32 : i32, i32
  }
}

module attributes {stable_mosaic.version = 11 : i64} {
  func.func @_linear_kernel(%arg0: i32, %arg1: memref<32x128xf32, #tpu.memory_space<vmem>>, %arg2: memref<128x64xf32, #tpu.memory_space<vmem>>, %arg3: memref<1x64xf32, #tpu.memory_space<vmem>>, %arg4: memref<32x64xf32, #tpu.memory_space<vmem>>) attributes {dimension_semantics = [#tpu.dimension_semantics<parallel>], iteration_bounds = array<i64: 1>, scalar_prefetch = 0 : i64, scratch_operands = 0 : i64, tpu.core_type = #tpu.core_type<tc>, window_params = [{transform_indices = @transform_0, window_bounds = array<i64: 32, 128>}, {pipeline_mode = #tpu.pipeline_mode<synchronous>, transform_indices = @transform_1, window_bounds = array<i64: 128, 64>}, {pipeline_mode = #tpu.pipeline_mode<synchronous>, transform_indices = @transform_2, window_bounds = array<i64: 1, 64>}, {transform_indices = @transform_3, window_bounds = array<i64: 32, 64>}]} {
    %c0 = arith.constant 0 : index
    %c0_0 = arith.constant 0 : index
    %0 = vector.load %arg1[%c0, %c0_0] : memref<32x128xf32, #tpu.memory_space<vmem>>, vector<32x128xf32>
    %c0_1 = arith.constant 0 : index
    %c0_2 = arith.constant 0 : index
    %1 = vector.load %arg2[%c0_1, %c0_2] : memref<128x64xf32, #tpu.memory_space<vmem>>, vector<128x64xf32>
    %cst = arith.constant dense<0.000000e+00> : vector<32x64xf32>
    %2 = tpu.matmul %0, %1, %cst {dimension_numbers = #tpu.dot_dimension_numbers<[1], [0], [0], [1], [0, 0, 1, 1], [], []>} : vector<32x128xf32>, vector<128x64xf32>, vector<32x64xf32> -> vector<32x64xf32>
    %c0_3 = arith.constant 0 : index
    %c0_4 = arith.constant 0 : index
    %3 = vector.load %arg3[%c0_3, %c0_4] : memref<1x64xf32, #tpu.memory_space<vmem>>, vector<1x64xf32>
    %4 = vector.broadcast %3 : vector<1x64xf32> to vector<32x64xf32>
    %5 = arith.addf %2, %4 : vector<32x64xf32>
    %c0_5 = arith.constant 0 : index
    %c0_6 = arith.constant 0 : index
    %6 = vector.load %arg4[%c0_5, %c0_6] : memref<32x64xf32, #tpu.memory_space<vmem>>, vector<32x64xf32>
    tpu.vector_store %arg4[%c0_5, %c0_6], %5 {strides = array<i32>} : memref<32x64xf32, #tpu.memory_space<vmem>>, vector<32x64xf32>,
    return
  }
  func.func @transform_0(%arg0: i32) -> (i32, i32) {
    %c0_i32 = arith.constant 0 : i32
    %c0_i32_0 = arith.constant 0 : i32
    return %arg0, %c0_i32 : i32, i32
  }
  func.func @transform_1(%arg0: i32) -> (i32, i32) {
    %c0_i32 = arith.constant 0 : i32
    %c0_i32_0 = arith.constant 0 : i32
    %c0_i32_1 = arith.constant 0 : i32
    return %c0_i32, %c0_i32_0 : i32, i32
  }
  func.func @transform_2(%arg0: i32) -> (i32, i32) {
    %c0_i32 = arith.constant 0 : i32
    %c0_i32_0 = arith.constant 0 : i32
    %c0_i32_1 = arith.constant 0 : i32
    return %c0_i32, %c0_i32_0 : i32, i32
  }
  func.func @transform_3(%arg0: i32) -> (i32, i32) {
    %c0_i32 = arith.constant 0 : i32
    %c0_i32_0 = arith.constant 0 : i32
    return %arg0, %c0_i32 : i32, i32
  }
}

</mosaic_0001>

<bundles_post_ra>
// kernel: grounded_audio_bi_mha.10
= control target key start
LH: loop header
LB: loop body
LE: loop exit
PB: predicated region body
PF: predicated region fallthrough
CT: control target
= control target key end

     0   :  { %vm33_vm0 = vcmask 523264   ;;  %s265_s1 = inlined_call_operand.vmem [shape: f32[64,128], index: 1, kind: input, shape index: {}]   ;;  %s266_s0 = inlined_call_operand.vmem [shape: f32[32,64], index: 0, kind: input, shape index: {}]   ;;  %s267_s2 = inlined_call_operand.vmem [shape: f32[1,128], index: 2, kind: input, shape index: {}]   ;;  %s268_s3 = inlined_call_operand.vmem [shape: f32[32,128], index: 3, kind: output, shape index: {}]  }
   0x1   :  { %v25_v0 = vld [vmem:[%s265_s1 + $0x38] sm:$0xff]  ;;  %v24_v1 = vld [vmem:[%s265_s1 + $0x30] sm:$0xff]  ;;  %v23_v2 = vld [vmem:[%s265_s1 + $0x28] sm:$0xff] }
   0x2   :  { %156 = vmatprep.subr.mxu0 %v25_v0  ;;  %178 = vmatprep.subr.mxu1 %v25_v0  ;;  %v22_v3 = vld [vmem:[%s265_s1 + $0x20] sm:$0xff]  ;;  %v21_v4 = vld [vmem:[%s265_s1 + $0x18] sm:$0xff]  ;;  %v20_v5 = vld [vmem:[%s265_s1 + $0x10] sm:$0xff] }
   0x3   :  { %157 = vmatpush3.msra.mxu0 %v25_v0  ;;  %186 = vmatpush3.msra.mxu1 %v25_v0  ;;  %v19_v6 = vld [vmem:[%s265_s1 + $0x8] sm:$0xff]  ;;  %v18_v7 = vld [vmem:[%s265_s1] sm:$0xff]  ;;  %v16_v9 = vld [vmem:[%s266_s0 + $0x10] sm:$0xff] }
   0x4   :  { %158 = vmatprep.subr.mxu0 %v24_v1  ;;  %179 = vmatprep.subr.mxu1 %v24_v1  ;;  %v14_v8 = vld [vmem:[%s266_s0] sm:$0xff]  ;;  %v15_v10 = vld [vmem:[%s266_s0 + $0x8] sm:$0xff]  ;;  %v17_v11 = vld [vmem:[%s266_s0 + $0x18] sm:$0xff] }
   0x5   :  { %159 = vmatpush3.msra.mxu0 %v24_v1  ;;  %187 = vmatpush3.msra.mxu1 %v24_v1  ;;  %v139_v12 = vld [vmem:[%s267_s2] ss:$0 sm:$0xff] }
   0x6   :  { %160 = vmatprep.subr.mxu0 %v23_v2  ;;  %180 = vmatprep.subr.mxu1 %v23_v2 }
   0x7   :  { %161 = vmatpush3.msra.mxu0 %v23_v2  ;;  %188 = vmatpush3.msra.mxu1 %v23_v2 }
   0x8   :  { %162 = vmatprep.subr.mxu0 %v22_v3  ;;  %181 = vmatprep.subr.mxu1 %v22_v3 }
   0x9   :  { %163 = vmatpush3.msra.mxu0 %v22_v3  ;;  %189 = vmatpush3.msra.mxu1 %v22_v3 }
   0xa   :  { %164 = vmatprep.subr.mxu0 %v21_v4  ;;  %182 = vmatprep.subr.mxu1 %v21_v4 }
   0xb   :  { %165 = vmatpush3.msra.mxu0 %v21_v4  ;;  %190 = vmatpush3.msra.mxu1 %v21_v4 }
   0xc   :  { %166 = vmatprep.subr.mxu0 %v20_v5  ;;  %183 = vmatprep.subr.mxu1 %v20_v5 }
   0xd   :  { %167 = vmatpush3.msra.mxu0 %v20_v5  ;;  %191 = vmatpush3.msra.mxu1 %v20_v5 }
   0xe   :  { %168 = vmatprep.subr.mxu0 %v19_v6  ;;  %184 = vmatprep.subr.mxu1 %v19_v6 }
   0xf   :  { %169 = vmatpush3.msra.mxu0 %v19_v6  ;;  %192 = vmatpush3.msra.mxu1 %v19_v6 }
  0x10   :  { %170 = vmatprep.subr.mxu0 %v18_v7  ;;  %185 = vmatprep.subr.mxu1 %v18_v7 }
  0x11   :  { %171 = vmatpush3.msra.mxu0 %v18_v7  ;;  %193 = vmatpush3.msra.mxu1 %v18_v7 }
  0x12   :  { %172 = vmatprep.mubr.msk.f32.mxu0 %vm33_vm0, %v14_v8  ;;  %175 = vmatprep.mubr.msk.f32.mxu1 %vm33_vm0, %v16_v9 }
  0x13   :  { %173 = vmatmul.mubr.msk.f32.vlgmr.msra.gmra.mxu0 %vm33_vm0, %v15_v10  ;;  %176 = vmatmul.mubr.msk.f32.vlgmr.msra.gmra.mxu1 %vm33_vm0, %v17_v11 }
  0xd3   :  { %v174_v13 = vpop.f32.mrf.mxu0  ;;  %v177_v14 = vpop.f32.mrf.mxu1 }
  0xd4   :  { %v118_v15 = vadd.f32 %v174_v13, %v139_v12  ;;  %v128_v16 = vadd.f32 %v177_v14, %v139_v12 }
  0xd5   :  { %v112_v17 = vpop.f32.mrf.mxu0  ;;  %v122_v18 = vpop.f32.mrf.mxu1 }
  0xd6   :  { %132 = vst [vmem:[%s268_s3 + $0x8] sm:$0xff] %v118_v15  ;;  %134 = vst [vmem:[%s268_s3 + $0x18] sm:$0xff] %v128_v16  ;;  %v113_v19 = vadd.f32 %v139_v12, %v112_v17  ;;  %v123_v20 = vadd.f32 %v139_v12, %v122_v18 }
  0xd8   :  { %131 = vst [vmem:[%s268_s3] sm:$0xff] %v113_v19  ;;  %133 = vst [vmem:[%s268_s3 + $0x10] sm:$0xff] %v123_v20 }

// kernel: grounded_audio_bi_mha.8
= control target key start
LH: loop header
LB: loop body
LE: loop exit
PB: predicated region body
PF: predicated region fallthrough
CT: control target
= control target key end

     0   :  { %8 = vsyncpa [#allocation3], 0  ;;  %s391_s0 = inlined_call_operand.hbm [shape: f32[64,64], index: 0, kind: input, shape index: {}]   ;;  %s392_s1 = inlined_call_operand.hbm [shape: f32[64,128], index: 1, kind: input, shape index: {}]   ;;  %s393_s2 = inlined_call_operand.vmem [shape: f32[1,128], index: 2, kind: input, shape index: {}]   ;;  %s394_s3 = inlined_call_operand.vmem [shape: f32[64,128], index: 3, kind: output, shape index: {}]  }
   0x1   :  { %9 = vsyncpa [#allocation5], 0  ;;  %s326_s12 = smov [#allocation2]  }
   0x2   :  { %s15_s13 = sshll.u32 %s326_s12, 4  ;;  %s16_s13 = int_to_ptr.vmem [resolvable:$true] %s15_s13 }
   0x3   :  { %s290_s14 = scalar_lea.vmem %s16_s13, 1024  ;;  %p295_p1 = scmp.lt.s32.totalorder %s16_s13, %s16_s13 }
   0x4   :  { %p291_p0 = scmp.ne.s32.totalorder %s16_s13, %s290_s14  ;;  %p296_p2 = scmp.lt.s32.totalorder %s290_s14, %s290_s14 }
   0x6   :  { %p297_p3 = por %p296_p2, %p295_p1 }
   0x8   :  { %p298_p4 = pnand %p297_p3, %p291_p0 }
   0xa   :  { %301 = shalt.err (!%p298_p4)
}
   0xb   :  { %s327_s15 = smov 128   ;;  %s328_s16 = smov 8  }
   0xc   :  { %21 = dma.hbm_to_vmem [thread:$0]  %s391_s0, 1024, %s16_s13, [#allocation3], %s327_s15, %s327_s15, %s328_s16  }
   0xd   :  { %s329_s19 = smov [#allocation4]  }
   0xe   :  { %s27_s20 = sshll.u32 %s329_s19, 4  ;;  %s28_s20 = int_to_ptr.vmem [resolvable:$true] %s27_s20 }
   0xf   :  { %s310_s21 = scalar_lea.vmem %s28_s20, 1024  ;;  %p315_p6 = scmp.lt.s32.totalorder %s28_s20, %s28_s20 }
  0x10   :  { %p311_p5 = scmp.ne.s32.totalorder %s28_s20, %s310_s21  ;;  %p316_p7 = scmp.lt.s32.totalorder %s310_s21, %s310_s21 }
  0x12   :  { %p317_p8 = por %p316_p7, %p315_p6 }
  0x14   :  { %p318_p9 = pnand %p317_p8, %p311_p5 }
  0x16   :  { %321 = shalt.err (!%p318_p9)
}
  0x17   :  { %33 = dma.hbm_to_vmem [thread:$0]  %s392_s1, 1024, %s28_s20, [#allocation5], %s327_s15, %s327_s15, %s328_s16  }
  0x18   :  { %322 = dma.done.wait [#allocation3], 1024  }
  0x19   :  { %323 = vsyncadd [#allocation3], 4294966272 }
  0x1a   :  { %324 = dma.done.wait [#allocation5], 1024  }
  0x1b   :  { %325 = vsyncadd [#allocation5], 4294966272  ;;  %v57_v0 = vld [vmem:[#allocation4 + $0x38] sm:$0xff]  ;;  %v56_v1 = vld [vmem:[#allocation4 + $0x30] sm:$0xff]  ;;  %vm65_vm0 = vcmask 523264  }
  0x1c   :  { %234 = vmatprep.subr.mxu0 %v57_v0  ;;  %262 = vmatprep.subr.mxu1 %v57_v0  ;;  %v55_v2 = vld [vmem:[#allocation4 + $0x28] sm:$0xff]  ;;  %v54_v3 = vld [vmem:[#allocation4 + $0x20] sm:$0xff]  ;;  %v53_v4 = vld [vmem:[#allocation4 + $0x18] sm:$0xff] }
  0x1d   :  { %235 = vmatpush3.msra.mxu0 %v57_v0  ;;  %270 = vmatpush3.msra.mxu1 %v57_v0  ;;  %v52_v5 = vld [vmem:[#allocation4 + $0x10] sm:$0xff]  ;;  %v51_v6 = vld [vmem:[#allocation4 + $0x8] sm:$0xff]  ;;  %v50_v7 = vld [vmem:[#allocation4] sm:$0xff] }
  0x1e   :  { %236 = vmatprep.subr.mxu0 %v56_v1  ;;  %263 = vmatprep.subr.mxu1 %v56_v1  ;;  %v42_v8 = vld [vmem:[#allocation2] sm:$0xff]  ;;  %v43_v10 = vld [vmem:[#allocation2 + $0x8] sm:$0xff]  ;;  %v44_v12 = vld [vmem:[#allocation2 + $0x10] sm:$0xff] }
  0x1f   :  { %237 = vmatpush3.msra.mxu0 %v56_v1  ;;  %271 = vmatpush3.msra.mxu1 %v56_v1  ;;  %v46_v9 = vld [vmem:[#allocation2 + $0x20] sm:$0xff]  ;;  %v47_v11 = vld [vmem:[#allocation2 + $0x28] sm:$0xff]  ;;  %v48_v13 = vld [vmem:[#allocation2 + $0x30] sm:$0xff] }
  0x20   :  { %238 = vmatprep.subr.mxu0 %v55_v2  ;;  %264 = vmatprep.subr.mxu1 %v55_v2  ;;  %v45_v14 = vld [vmem:[#allocation2 + $0x18] sm:$0xff]  ;;  %v209_v16 = vld [vmem:[%s393_s2] ss:$0 sm:$0xff] }
  0x21   :  { %239 = vmatpush3.msra.mxu0 %v55_v2  ;;  %272 = vmatpush3.msra.mxu1 %v55_v2  ;;  %v49_v15 = vld [vmem:[#allocation2 + $0x38] sm:$0xff] }
  0x22   :  { %240 = vmatprep.subr.mxu0 %v54_v3  ;;  %265 = vmatprep.subr.mxu1 %v54_v3 }
  0x23   :  { %241 = vmatpush3.msra.mxu0 %v54_v3  ;;  %273 = vmatpush3.msra.mxu1 %v54_v3 }
  0x24   :  { %242 = vmatprep.subr.mxu0 %v53_v4  ;;  %266 = vmatprep.subr.mxu1 %v53_v4 }
  0x25   :  { %243 = vmatpush3.msra.mxu0 %v53_v4  ;;  %274 = vmatpush3.msra.mxu1 %v53_v4 }
  0x26   :  { %244 = vmatprep.subr.mxu0 %v52_v5  ;;  %267 = vmatprep.subr.mxu1 %v52_v5 }
  0x27   :  { %245 = vmatpush3.msra.mxu0 %v52_v5  ;;  %275 = vmatpush3.msra.mxu1 %v52_v5 }
  0x28   :  { %246 = vmatprep.subr.mxu0 %v51_v6  ;;  %268 = vmatprep.subr.mxu1 %v51_v6 }
  0x29   :  { %247 = vmatpush3.msra.mxu0 %v51_v6  ;;  %276 = vmatpush3.msra.mxu1 %v51_v6 }
  0x2a   :  { %248 = vmatprep.subr.mxu0 %v50_v7  ;;  %269 = vmatprep.subr.mxu1 %v50_v7 }
  0x2b   :  { %249 = vmatpush3.msra.mxu0 %v50_v7  ;;  %277 = vmatpush3.msra.mxu1 %v50_v7 }
  0x2c   :  { %250 = vmatprep.mubr.msk.f32.mxu0 %vm65_vm0, %v42_v8  ;;  %256 = vmatprep.mubr.msk.f32.mxu1 %vm65_vm0, %v46_v9 }
  0x2d   :  { %251 = vmatmul.mubr.msk.f32.vlgmr.msra.gmra.mxu0 %vm65_vm0, %v43_v10  ;;  %257 = vmatmul.mubr.msk.f32.vlgmr.msra.gmra.mxu1 %vm65_vm0, %v47_v11 }
  0x2e   :  { %253 = vmatprep.mubr.msk.f32.mxu0 %vm65_vm0, %v44_v12  ;;  %259 = vmatprep.mubr.msk.f32.mxu1 %vm65_vm0, %v48_v13 }
  0x31   :  { %254 = vmatmul.mubr.msk.f32.gmra.mxu0 %vm65_vm0, %v45_v14  ;;  %260 = vmatmul.mubr.msk.f32.gmra.mxu1 %vm65_vm0, %v49_v15 }
  0xed   :  { %v252_v17 = vpop.f32.mrf.mxu0  ;;  %v258_v18 = vpop.f32.mrf.mxu1 }
  0xee   :  { %v162_v19 = vadd.f32 %v252_v17, %v209_v16  ;;  %v182_v20 = vadd.f32 %v258_v18, %v209_v16 }
  0xef   :  { %v156_v21 = vpop.f32.mrf.mxu0  ;;  %v176_v22 = vpop.f32.mrf.mxu1 }
  0xf0   :  { %196 = vst [vmem:[%s394_s3 + $0x8] sm:$0xff] %v162_v19  ;;  %200 = vst [vmem:[%s394_s3 + $0x28] sm:$0xff] %v182_v20  ;;  %v157_v23 = vadd.f32 %v209_v16, %v156_v21  ;;  %v177_v24 = vadd.f32 %v209_v16, %v176_v22 }
  0xf1   :  { %v255_v25 = vpop.f32.mrf.mxu0  ;;  %v261_v26 = vpop.f32.mrf.mxu1 }
  0xf2   :  { %195 = vst [vmem:[%s394_s3] sm:$0xff] %v157_v23  ;;  %199 = vst [vmem:[%s394_s3 + $0x20] sm:$0xff] %v177_v24  ;;  %v172_v27 = vadd.f32 %v255_v25, %v209_v16  ;;  %v192_v28 = vadd.f32 %v261_v26, %v209_v16 }
  0xf3   :  { %v166_v29 = vpop.f32.mrf.mxu0  ;;  %v186_v30 = vpop.f32.mrf.mxu1 }
  0xf4   :  { %198 = vst [vmem:[%s394_s3 + $0x18] sm:$0xff] %v172_v27  ;;  %202 = vst [vmem:[%s394_s3 + $0x38] sm:$0xff] %v192_v28  ;;  %v167_v31 = vadd.f32 %v209_v16, %v166_v29  ;;  %v187_v32 = vadd.f32 %v209_v16, %v186_v30 }
  0xf6   :  { %197 = vst [vmem:[%s394_s3 + $0x10] sm:$0xff] %v167_v31  ;;  %201 = vst [vmem:[%s394_s3 + $0x30] sm:$0xff] %v187_v32 }
  0xf7   :  { %207 = vsyncpa [#allocation3], 1 }
  0xf8   :  { %208 = vsyncpa [#allocation5], 1 }

// kernel: grounded_audio_bi_mha.12
= control target key start
LH: loop header
LB: loop body
LE: loop exit
PB: predicated region body
PF: predicated region fallthrough
CT: control target
= control target key end

     0   :  { %s698_s12 = smov 0   ;;  %s700_s13 = smov 0   ;;  %s770_s0 = inlined_call_operand.vmem [shape: f32[2,4,32,32], index: 0, kind: input, shape index: {}]   ;;  %s771_s1 = inlined_call_operand.vmem [shape: f32[2,4,16,32], index: 1, kind: input, shape index: {}]   ;;  %s772_s2 = inlined_call_operand.vmem [shape: f32[2,4,32,16], index: 2, kind: output, shape index: {0}]   ;;  %s773_s3 = inlined_call_operand.vmem [shape: f32[2,4,1,1], index: 3, kind: output, shape index: {1}]  }
   0x1   :  { %s702_s14 = smov 0   ;;  %s704_s15 = smov 0  }
   0x2   :  { %s706_s16 = smov 0  }
   0x3 LB: > { %s23_s17 = sadd.s32 1, %s668_s14  ;;  %s26_s18 = sadd.s32 1, %s672_s15  ;;  %s676_s16 = sphi %s706_s16, %s14_s16   ;;  %s672_s15 = sphi %s704_s15, %s777_s15   ;;  %s668_s14 = sphi %s702_s14, %s776_s14   ;;  %s664_s13 = sphi %s700_s13, %s775_s13   ;;  %s660_s12 = sphi %s698_s12, %s774_s12  }
   0x4   : > { %p24_p0 = scmp.ge.s32.totalorder %s23_s17, 4  ;;  %p559_p1 = scmp.ge.s32.totalorder %s676_s16, 1 }
   0x5   : > { %p178_p2 = scmp.lt.s32.totalorder %s676_s16, 9 }
   0x6   : > { %s779_s17 = smov (%p24_p0, %s23_s17), 0  ;;  %s781_s18 = smov (!%p24_p0, %s26_s18), %s672_s15 }
   0x7   : > { %p179_p3 = pnand %p559_p1, %p178_p2  ;;  %p28_p4 = scmp.ge.s32.totalorder %s781_s18, 2 }
   0x8   : > { %p226_p5 = scmp.lt.s32.totalorder (!%p179_p3), %s664_s13, 1  ;;  %p228_p6 = scmp.lt.s32.totalorder (!%p179_p3), %s660_s12, 3 }
   0x9   : > { %s783_s18 = smov (%p28_p4, %s781_s18), 0  ;;  %182 = sbr.rel (%p179_p3) target bundleno = 384 (0x180), region = 28 }
   0xe   : > { %s785_s13 = smov (!%p226_p5, %s664_s13), 1  ;;  %s787_s12 = smov (!%p228_p6, %s660_s12), 3  ;;  %vm266_vm0 = vcmask 261120   ;;  %vm370_vm1 = vcmask 130048   ;;  %vm396_vm2 = vcmask 0  }
   0xf   : > { %s564_s19 = sshll.u32 %s785_s13, 3  ;;  %s569_s20 = sshll.u32 %s785_s13, 2 }
  0x10   : > { %s563_s21 = sshll.u32 %s787_s12, 1  ;;  %s728_s22 = sadd.s32 %s569_s20, %s787_s12 }
  0x11   : > { %s241_s23 = sadd.s32 %s564_s19, %s563_s21  ;;  %s560_s24 = sshll.u32 %s787_s12, 2 }
  0x12   : > { %s565_s25 = sshll.u32 %s241_s23, 3  ;;  %s561_s26 = sshll.u32 %s785_s13, 4 }
  0x13   : > { %s243_s29 = scalar_lea.vmem %s771_s1, %s565_s25  ;;  %s232_s30 = sadd.s32 %s561_s26, %s560_s24 }
  0x14   : > { %v265_v0 = vld [vmem:[%s243_s29 + $0x8] sm:$0xff]  ;;  %v264_v1 = vld [vmem:[%s243_s29] sm:$0xff]  ;;  %s562_s4 = sshll.u32 %s232_s30, 3  ;;  %s259_s13 = scalar_lea.vmem %s773_s3, %s728_s22 }
  0x15   : > { %584 = vmatprep.subr.msk.mxu0 %vm266_vm0, %v265_v0  ;;  %594 = vmatprep.subr.msk.mxu1 %vm266_vm0, %v265_v0  ;;  %s234_s7 = scalar_lea.vmem %s770_s0, %s562_s4  ;;  %s252_s10 = scalar_lea.vmem %s772_s2, %s562_s4 }
  0x16   : > { %585 = vmatpush3.xpose.msk.msra.mxu0 %vm266_vm0, %v265_v0  ;;  %596 = vmatpush3.xpose.msk.msra.mxu1 %vm266_vm0, %v265_v0  ;;  %v260_v2 = vld [vmem:[%s234_s7] sm:$0xff]  ;;  %v262_v3 = vld [vmem:[%s234_s7 + $0x10] sm:$0xff]  ;;  %v261_v4 = vld [vmem:[%s234_s7 + $0x8] sm:$0xff] }
  0x17   : > { %586 = vmatprep.subr.msk.mxu0 %vm266_vm0, %v264_v1  ;;  %595 = vmatprep.subr.msk.mxu1 %vm266_vm0, %v264_v1  ;;  %v263_v5 = vld [vmem:[%s234_s7 + $0x18] sm:$0xff] }
  0x18   : > { %588 = vmatprep.mubr.msk.f32.mxu0 %vm266_vm0, %v260_v2  ;;  %591 = vmatprep.mubr.msk.f32.mxu1 %vm266_vm0, %v262_v3 }
  0x1a   : > { %587 = vmatpush3.xpose.msk.msra.mxu0 %vm266_vm0, %v264_v1  ;;  %597 = vmatpush3.xpose.msk.msra.mxu1 %vm266_vm0, %v264_v1 }
  0x1d   : > { %589 = vmatmul.mubr.msk.f32.vlgmr.msra.gmra.mxu0 %vm266_vm0, %v261_v4  ;;  %592 = vmatmul.mubr.msk.f32.vlgmr.msra.gmra.mxu1 %vm266_vm0, %v263_v5 }
  0xdd   : > { %v590_v6 = vpop.f32.mrf.mxu0  ;;  %v593_v7 = vpop.f32.mrf.mxu1 }
  0xde   : > { %372 = vst.msk [vmem:[%s252_s10 + $0x8] sm:$0xff] %vm370_vm1, %v590_v6  ;;  %374 = vst.msk [vmem:[%s252_s10 + $0x18] sm:$0xff] %vm370_vm1, %v593_v7  ;;  %v384_v12 = vsel %vm370_vm1, %v593_v7, -inf  ;;  %v378_v13 = vsel %vm370_vm1, %v590_v6, -inf }
  0xdf   : > { %v351_v8 = vpop.f32.mrf.mxu0  ;;  %v361_v9 = vpop.f32.mrf.mxu1 }
  0xe0   : > { %371 = vst.msk [vmem:[%s252_s10] sm:$0xff] %vm370_vm1, %v351_v8  ;;  %373 = vst.msk [vmem:[%s252_s10 + $0x10] sm:$0xff] %vm370_vm1, %v361_v9  ;;  %v381_v10 = vsel %vm370_vm1, %v361_v9, -inf  ;;  %v375_v11 = vsel %vm370_vm1, %v351_v8, -inf }
  0xe1   : > { %382 = vmax.xlane.f32.xlu1 %v381_v10  ;;  %376 = vmax.xlane.f32.xlu0 %v375_v11 }
  0xe5   : > { %385 = vmax.xlane.f32.xlu1 %v384_v12  ;;  %379 = vmax.xlane.f32.xlu0 %v378_v13 }
 0x16a   : > { %v383_v14 = vpop.xlane.xlu1 %382  ;;  %v377_v15 = vpop.xlane.xlu0 %376 }
 0x16e   : > { %v386_v16 = vpop.xlane.xlu1 %385  ;;  %v380_v17 = vpop.xlane.xlu0 %379 }
 0x16f   : > { %v388_v18 = vmax.f32 %v383_v14, %v386_v16  ;;  %v387_v19 = vmax.f32 %v377_v15, %v380_v17 }
 0x171   : > { %v389_v20 = vmax.f32 %v387_v19, %v388_v18 }
 0x173   : > { %v390_v21 = vrot.slane %v389_v20, 4 }
 0x175   : > { %v391_v22 = vmax.f32 %v389_v20, %v390_v21 }
 0x177   : > { %v392_v23 = vrot.slane %v391_v22, 2 }
 0x179   : > { %v393_v24 = vmax.f32 %v391_v22, %v392_v23 }
 0x17b   : > { %v394_v25 = vrot.slane %v393_v24, 1 }
 0x17d   : > { %v395_v26 = vmax.f32 %v393_v24, %v394_v25 }
 0x17f   : > { %397 = vst.msk [vmem:[%s259_s13] sm:$0x1] %vm396_vm2, %v395_v26 }
 0x180 PF: > { %s14_s16 = sadd.s32 1, %s676_s16   ;;  %s774_s12 = smov %s668_s14 }
 0x181   : > { %p11_p7 = scmp.ge.s32.totalorder %s14_s16, 10   ;;  %s775_s13 = smov %s672_s15 }
 0x182   : > { %s776_s14 = smov %s779_s17  ;;  %s777_s15 = smov %s783_s18 }
 0x183   :  { %13 = sbr.rel (!%p11_p7) target bundleno = 3 (0x3), region = 73 }

// kernel: grounded_audio_bi_mha.9
= control target key start
LH: loop header
LB: loop body
LE: loop exit
PB: predicated region body
PF: predicated region fallthrough
CT: control target
= control target key end

     0   :  { %vm37_vm0 = vcmask 523264   ;;  %s351_s1 = inlined_call_operand.vmem [shape: f32[64,128], index: 1, kind: input, shape index: {}]   ;;  %s352_s0 = inlined_call_operand.vmem [shape: f32[64,64], index: 0, kind: input, shape index: {}]   ;;  %s353_s2 = inlined_call_operand.vmem [shape: f32[1,128], index: 2, kind: input, shape index: {}]   ;;  %s354_s3 = inlined_call_operand.vmem [shape: f32[64,128], index: 3, kind: output, shape index: {}]  }
   0x1   :  { %v29_v0 = vld [vmem:[%s351_s1 + $0x38] sm:$0xff]  ;;  %v28_v1 = vld [vmem:[%s351_s1 + $0x30] sm:$0xff]  ;;  %v27_v2 = vld [vmem:[%s351_s1 + $0x28] sm:$0xff] }
   0x2   :  { %204 = vmatprep.subr.mxu0 %v29_v0  ;;  %232 = vmatprep.subr.mxu1 %v29_v0  ;;  %v26_v3 = vld [vmem:[%s351_s1 + $0x20] sm:$0xff]  ;;  %v25_v4 = vld [vmem:[%s351_s1 + $0x18] sm:$0xff]  ;;  %v24_v5 = vld [vmem:[%s351_s1 + $0x10] sm:$0xff] }
   0x3   :  { %205 = vmatpush3.msra.mxu0 %v29_v0  ;;  %240 = vmatpush3.msra.mxu1 %v29_v0  ;;  %v23_v6 = vld [vmem:[%s351_s1 + $0x8] sm:$0xff]  ;;  %v22_v7 = vld [vmem:[%s351_s1] sm:$0xff]  ;;  %v16_v12 = vld [vmem:[%s352_s0 + $0x10] sm:$0xff] }
   0x4   :  { %206 = vmatprep.subr.mxu0 %v28_v1  ;;  %233 = vmatprep.subr.mxu1 %v28_v1  ;;  %v14_v8 = vld [vmem:[%s352_s0] sm:$0xff]  ;;  %v15_v10 = vld [vmem:[%s352_s0 + $0x8] sm:$0xff]  ;;  %v20_v13 = vld [vmem:[%s352_s0 + $0x30] sm:$0xff] }
   0x5   :  { %207 = vmatpush3.msra.mxu0 %v28_v1  ;;  %241 = vmatpush3.msra.mxu1 %v28_v1  ;;  %v18_v9 = vld [vmem:[%s352_s0 + $0x20] sm:$0xff]  ;;  %v19_v11 = vld [vmem:[%s352_s0 + $0x28] sm:$0xff]  ;;  %v17_v14 = vld [vmem:[%s352_s0 + $0x18] sm:$0xff] }
   0x6   :  { %208 = vmatprep.subr.mxu0 %v27_v2  ;;  %234 = vmatprep.subr.mxu1 %v27_v2  ;;  %v21_v15 = vld [vmem:[%s352_s0 + $0x38] sm:$0xff]  ;;  %v179_v16 = vld [vmem:[%s353_s2] ss:$0 sm:$0xff] }
   0x7   :  { %209 = vmatpush3.msra.mxu0 %v27_v2  ;;  %242 = vmatpush3.msra.mxu1 %v27_v2 }
   0x8   :  { %210 = vmatprep.subr.mxu0 %v26_v3  ;;  %235 = vmatprep.subr.mxu1 %v26_v3 }
   0x9   :  { %211 = vmatpush3.msra.mxu0 %v26_v3  ;;  %243 = vmatpush3.msra.mxu1 %v26_v3 }
   0xa   :  { %212 = vmatprep.subr.mxu0 %v25_v4  ;;  %236 = vmatprep.subr.mxu1 %v25_v4 }
   0xb   :  { %213 = vmatpush3.msra.mxu0 %v25_v4  ;;  %244 = vmatpush3.msra.mxu1 %v25_v4 }
   0xc   :  { %214 = vmatprep.subr.mxu0 %v24_v5  ;;  %237 = vmatprep.subr.mxu1 %v24_v5 }
   0xd   :  { %215 = vmatpush3.msra.mxu0 %v24_v5  ;;  %245 = vmatpush3.msra.mxu1 %v24_v5 }
   0xe   :  { %216 = vmatprep.subr.mxu0 %v23_v6  ;;  %238 = vmatprep.subr.mxu1 %v23_v6 }
   0xf   :  { %217 = vmatpush3.msra.mxu0 %v23_v6  ;;  %246 = vmatpush3.msra.mxu1 %v23_v6 }
  0x10   :  { %218 = vmatprep.subr.mxu0 %v22_v7  ;;  %239 = vmatprep.subr.mxu1 %v22_v7 }
  0x11   :  { %219 = vmatpush3.msra.mxu0 %v22_v7  ;;  %247 = vmatpush3.msra.mxu1 %v22_v7 }
  0x12   :  { %220 = vmatprep.mubr.msk.f32.mxu0 %vm37_vm0, %v14_v8  ;;  %226 = vmatprep.mubr.msk.f32.mxu1 %vm37_vm0, %v18_v9 }
  0x13   :  { %221 = vmatmul.mubr.msk.f32.vlgmr.msra.gmra.mxu0 %vm37_vm0, %v15_v10  ;;  %227 = vmatmul.mubr.msk.f32.vlgmr.msra.gmra.mxu1 %vm37_vm0, %v19_v11 }
  0x14   :  { %223 = vmatprep.mubr.msk.f32.mxu0 %vm37_vm0, %v16_v12  ;;  %229 = vmatprep.mubr.msk.f32.mxu1 %vm37_vm0, %v20_v13 }
  0x17   :  { %224 = vmatmul.mubr.msk.f32.gmra.mxu0 %vm37_vm0, %v17_v14  ;;  %230 = vmatmul.mubr.msk.f32.gmra.mxu1 %vm37_vm0, %v21_v15 }
  0xd3   :  { %v222_v17 = vpop.f32.mrf.mxu0  ;;  %v228_v18 = vpop.f32.mrf.mxu1 }
  0xd4   :  { %v134_v19 = vadd.f32 %v222_v17, %v179_v16  ;;  %v154_v20 = vadd.f32 %v228_v18, %v179_v16 }
  0xd5   :  { %v128_v21 = vpop.f32.mrf.mxu0  ;;  %v148_v22 = vpop.f32.mrf.mxu1 }
  0xd6   :  { %168 = vst [vmem:[%s354_s3 + $0x8] sm:$0xff] %v134_v19  ;;  %172 = vst [vmem:[%s354_s3 + $0x28] sm:$0xff] %v154_v20  ;;  %v129_v23 = vadd.f32 %v179_v16, %v128_v21  ;;  %v149_v24 = vadd.f32 %v179_v16, %v148_v22 }
  0xd7   :  { %v225_v25 = vpop.f32.mrf.mxu0  ;;  %v231_v26 = vpop.f32.mrf.mxu1 }
  0xd8   :  { %167 = vst [vmem:[%s354_s3] sm:$0xff] %v129_v23  ;;  %171 = vst [vmem:[%s354_s3 + $0x20] sm:$0xff] %v149_v24  ;;  %v144_v27 = vadd.f32 %v225_v25, %v179_v16  ;;  %v164_v28 = vadd.f32 %v231_v26, %v179_v16 }
  0xd9   :  { %v138_v29 = vpop.f32.mrf.mxu0  ;;  %v158_v30 = vpop.f32.mrf.mxu1 }
  0xda   :  { %170 = vst [vmem:[%s354_s3 + $0x18] sm:$0xff] %v144_v27  ;;  %174 = vst [vmem:[%s354_s3 + $0x38] sm:$0xff] %v164_v28  ;;  %v139_v31 = vadd.f32 %v179_v16, %v138_v29  ;;  %v159_v32 = vadd.f32 %v179_v16, %v158_v30 }
  0xdc   :  { %169 = vst [vmem:[%s354_s3 + $0x10] sm:$0xff] %v139_v31  ;;  %173 = vst [vmem:[%s354_s3 + $0x30] sm:$0xff] %v159_v32 }

// kernel: grounded_audio_bi_mha.13
= control target key start
LH: loop header
LB: loop body
LE: loop exit
PB: predicated region body
PF: predicated region fallthrough
CT: control target
= control target key end

     0   :  { %s1742_s0 = inlined_call_operand.<no memory space> [shape: f32[1,1], index: 0, kind: input, shape index: {}]   ;;  %s1743_s1 = inlined_call_operand.vmem [shape: f32[2,4,32,16], index: 1, kind: input, shape index: {}]   ;;  %s1744_s2 = inlined_call_operand.vmem [shape: s32[2,1,16], index: 2, kind: input, shape index: {}]   ;;  %s1745_s3 = inlined_call_operand.vmem [shape: s32[2,1,32], index: 3, kind: input, shape index: {}]   ;;  %s1746_s4 = inlined_call_operand.vmem [shape: f32[2,4,16,32], index: 4, kind: input, shape index: {}]   ;;  %s1747_s5 = inlined_call_operand.vmem [shape: f32[2,4,32,32], index: 5, kind: input, shape index: {}]   ;;  %s1748_s6 = inlined_call_operand.vmem [shape: f32[2,4,32,16], index: 6, kind: output, shape index: {0}]   ;;  %s1749_s7 = inlined_call_operand.hbm [shape: f32[2,4,16,32], index: 7, kind: output, shape index: {1}]   ;;  %s1750_s8 = inlined_call_operand.vmem [shape: f32[2,4,32,32], index: 8, kind: output, shape index: {2}]   ;;  %s1751_s9 = inlined_call_operand.vmem [shape: f32[2,4,16,32], index: 9, kind: output, shape index: {3}]  }
   0x1   :  { %v15_v0 = vstv %s1742_s0 }
   0x2   :  { %16 = vst [vmem:[#allocation2] sm:$0x1] %v15_v0 }
   0x3   :  { %17 = vsyncpa [#allocation4], 0 }
   0x4   :  { %19 = vsyncpa [#allocation4 + $0x1], 0  ;;  %s1527_s11 = smov 0   ;;  %s1529_s12 = smov 0  }
   0x5   :  { %s1531_s13 = smov 0   ;;  %s1533_s14 = smov 0  }
   0x6   :  { %s1535_s15 = smov 0   ;;  %s1537_s16 = smov 0  }
   0x7   :  { %s1539_s17 = smov 0   ;;  %s1541_s18 = smov 0  }
   0x8 LB: > { %1756 = sst [smem:[#allocation6_spill]] %s1464_s17  ;;  %s1200_s0 = sadd.s32 4294967295, %s1468_s18   ;;  %s1468_s18 = sphi %s1541_s18, %s25_s18   ;;  %s1464_s17 = sphi %s1539_s17, %s1764_s17   ;;  %s1460_s16 = sphi %s1537_s16, %s1769_s16   ;;  %s1456_s15 = sphi %s1535_s15, %s1762_s15   ;;  %s1452_s14 = sphi %s1533_s14, %s1768_s14   ;;  %s1448_s13 = sphi %s1531_s13, %s1767_s13   ;;  %s1444_s12 = sphi %s1529_s12, %s1766_s12   ;;  %s1440_s11 = sphi %s1527_s11, %s1765_s11  }
   0x9   : > { %s1201_s19 = sadd.s32 4294967294, %s1468_s18   ;;  %s34_s20 = sadd.s32 1, %s1460_s16 }
   0xa   : > { %p35_p0 = scmp.ge.s32.totalorder %s34_s20, 4  ;;  %s37_s21 = sadd.s32 1, %s1464_s17 }
   0xb   : > { %p241_p1 = scmp.ne.s32.totalorder %s1448_s13, %s1444_s12  ;;  %p242_p2 = scmp.eq.s32.totalorder %s1200_s0, 7 }
   0xc   : > { %s1771_s20 = smov (%p35_p0, %s34_s20), 0  ;;  %s1773_s21 = smov (!%p35_p0, %s37_s21), %s1464_s17 }
   0xd   : > { %1757 = sst [smem:[#allocation7_spill]] %s1771_s20  ;;  %s227_s22 = ssub.s32 %s1460_s16, %s1771_s20 }
   0xe   : > { %p1578_p3 = por %p242_p2, %p241_p1  ;;  %p39_p4 = scmp.ge.s32.totalorder %s1773_s21, 2 }
   0xf   : > { %p247_p5 = scmp.ne.s32.totalorder %s1444_s12, %s1440_s11  ;;  %p248_p6 = scmp.eq.s32.totalorder %s1201_s19, 7 }
  0x10   : > { %p1204_p7 = scmp.ge.s32.totalorder %s1468_s18, 1  ;;  %s1775_s21 = smov (%p39_p4, %s1773_s21), 0 }
  0x11   : > { %1759 = sst [smem:[#allocation8_spill]] %s1775_s21  ;;  %p1587_p8 = por %p248_p6, %p247_p5 }
  0x12   : > { %p373_p9 = scmp.lt.s32.totalorder %s1468_s18, 9  ;;  %s226_s25 = ssub.s32 %s1464_s17, %s1775_s21 }
  0x13   : > { %s231_s26 = sadd.s32 1, %s1448_s13  ;;  %s228_s27 = sor.u32 %s227_s22, %s226_s25 }
  0x14   : > { %p374_p10 = pnand %p1204_p7, %p373_p9  ;;  %p229_p11 = scmp.eq.s32.totalorder %s228_s27, 0 }
  0x15   : > { %p464_p12 = scmp.lt.s32.totalorder (!%p374_p10), %s1456_s15, 1  ;;  %p466_p13 = scmp.lt.s32.totalorder (!%p374_p10), %s1452_s14, 3 }
  0x16   : > { %s1596_s28 = scalar_select %p229_p11, %s1448_s13, %s231_s26  }
  0x17   : > { %377 = sbr.rel (%p374_p10) target bundleno = 940 (0x3ac), region = 44 }
  0x1c   : > { %v1224_v1 = vld [vmem:[#allocation2] ss:$0 sm:$0xff]  ;;  %v1470_v2 = vmov 0   ;;  %s1601_s29 = scalar_select %p464_p12, %s1456_s15, 1  ;;  %v553_v3 = vlaneseq  ;;  %vm710_vm2 = vcmask 261120   ;;  %vm562_vm3 = vcmask 130048  }
  0x1d   : > { %1351 = vset.pattern.permute.xlu0 %v1470_v2  ;;  %s1604_s30 = scalar_select %p466_p13, %s1452_s14, 3 }
  0x1e   : > { %535 = vperm.xlu0 %1351, %v1224_v1   ;;  %s475_s19 = scalar_lea.vmem %s1744_s2, %s1601_s29  ;;  %s1207_s25 = sshll.u32 %s1601_s29, 4  ;;  %v554_v5 = vshrl.u32 %v553_v3, 7 }
  0x1f   : > { %s1206_s22 = sshll.u32 %s1604_s30, 2  ;;  %v550_v4 = vld [vmem:[%s475_s19] sm:$0x1]  ;;  %s478_s21 = scalar_lea.vmem %s1745_s3, %s1601_s29 }
  0x20   : > { %s470_s26 = sadd.s32 %s1207_s25, %s1206_s22  ;;  %vm551_vm0 = vcmp.ne.s32.totalorder %v550_v4, 0  ;;  %v555_v6 = vsub.s32 0, %v554_v5  ;;  %v759_v34 = vld [vmem:[%s478_s21] sm:$0x1]  ;;  %s1209_s10 = sshll.u32 %s1604_s30, 1 }
  0x21   : > { %s1612_s27 = sshll.u32 %s470_s26, 3  ;;  %v552_v7 = vsel %vm551_vm0, 1, %v1470_v2  ;;  %vm760_vm4 = vcmp.ne.s32.totalorder %v759_v34, 0  ;;  %s1210_s0 = sshll.u32 %s1601_s29, 3 }
  0x22   : > { %s472_s17 = scalar_lea.vmem %s1743_s1, %s1612_s27  ;;  %v556_v8 = vrot.slane %v552_v7, %v555_v6  ;;  %v761_v35 = vsel %vm760_vm4, 1, %v1470_v2  ;;  %s1636_s19 = sadd.s32 %s1210_s0, %s1209_s10 }
  0x23   : > { %v525_v9 = vld [vmem:[%s472_s17 + $0x8] sm:$0xff]  ;;  %v524_v10 = vld [vmem:[%s472_s17] sm:$0xff]  ;;  %v526_v14 = vld [vmem:[%s472_s17 + $0x10] sm:$0xff]  ;;  %v765_v36 = vrot.slane %v761_v35, %v555_v6  ;;  %s1755_s22 = sshll.u32 %s1636_s19, 3  ;;  %s496_s20 = scalar_lea.vmem %s1747_s5, %s1612_s27 }
  0x24   : > { %vm557_vm1 = vcmp.eq.s32.totalorder %v556_v8, 1  ;;  %v527_v19 = vld [vmem:[%s472_s17 + $0x18] sm:$0xff]  ;;  %s487_s17 = scalar_lea.vmem %s1746_s4, %s1755_s22  ;;  %s505_s0 = scalar_lea.vmem %s1748_s6, %s1612_s27 }
  0x25   : > { %vm766_vm5 = vcmp.eq.s32.totalorder %v765_v36, 1  ;;  %v612_v3 = vld [vmem:[%s487_s17 + $0x8] sm:$0xff]  ;;  %v611_v4 = vld [vmem:[%s487_s17] sm:$0xff]  ;;  %s439_s25 = sand.u32 1, %s1444_s12   ;;  %s1238_s10 = sshll.u32 %s1452_s14, 1 }
  0x26   : > { %1255 = vmatprep.subr.mxu0 %v612_v3  ;;  %s1205_s26 = sshll.u32 %s439_s25, 4 }
  0x27   : > { %1256 = vmatpush3.msra.mxu0 %v612_v3  ;;  %s441_s17 = scalar_lea.vmem [#allocation3], %s1205_s26 }
  0x28   : > { %1257 = vmatprep.subr.mxu0 %v611_v4  ;;  %s926_s21 = sshll.u32 %s441_s17, 4  ;;  %s1676_s21 = int_to_ptr.vmem [resolvable:$true] %s926_s21 }
  0x29   : > { %1258 = vmatpush3.msra.mxu0 %v611_v4  ;;  %s1376_s14 = scalar_lea.vmem %s1676_s21, 256 }
  0x2a   : > { %p1377_p0 = scmp.ne.s32.totalorder %s1676_s21, %s1376_s14 }
  0x2c   : > { %p1378_p1 = pnand %p1377_p0, %p1578_p3 }
  0x2e   : > { %p1379_p2 = pneg %p1378_p1 }
  0x99   : > { %v536_v11 = vpop.permute.xlu0 %535 }
  0x9a   : > { %v539_v12 = vsub.f32 %v525_v9, %v536_v11  ;;  %v538_v13 = vsub.f32 %v524_v10, %v536_v11  ;;  %v540_v16 = vsub.f32 %v526_v14, %v536_v11  ;;  %v541_v20 = vsub.f32 %v527_v19, %v536_v11 }
  0x9c   : > { %v1225_v15 = vclamps-f32 %v538_v13, 50000.0  ;;  %v1226_v18 = vclamps-f32 %v539_v12, 50000.0  ;;  %v1227_v22 = vclamps-f32 %v540_v16, 50000.0  ;;  %v1228_v24 = vclamps-f32 %v541_v20, 50000.0  ;;  %v796_v20 = vld [vmem:[%s496_s20 + $0x18] sm:$0xff] }
  0x9d   : > { %1265 = vmatprep.subr.mxu1 %v796_v20 }
  0x9e   : > { %v558_v17 = vsel %vm557_vm1, -3.4028235e+38, %v1225_v15  ;;  %v559_v21 = vsel %vm557_vm1, -3.4028235e+38, %v1226_v18  ;;  %v560_v23 = vsel %vm557_vm1, -3.4028235e+38, %v1227_v22  ;;  %1266 = vmatpush3.msra.mxu1 %v796_v20 }
  0x9f   : > { %715 = vxpose.xlu0.b32.start [1/4] (short) (narrow) %v558_v17, 16  ;;  %v561_v25 = vsel %vm557_vm1, -3.4028235e+38, %v1228_v24  ;;  %v563_v30 = vsel %vm562_vm3, %v558_v17, -inf  ;;  %v566_v31 = vsel %vm562_vm3, %v559_v21, -inf  ;;  %v569_v32 = vsel %vm562_vm3, %v560_v23, -inf }
  0xa0   : > { %v572_v33 = vsel %vm562_vm3, %v561_v25, -inf }
  0xa3   : > { %716 = vxpose.xlu0.b32.cont [2/4] (short) (narrow) %v559_v21, 16 }
  0xa7   : > { %717 = vxpose.xlu0.b32.cont [3/4] (short) (narrow) %v560_v23, 16 }
  0xab   : > { %718 = vxpose.xlu0.b32.end [4/4] (short) (narrow) %v561_v25, 16 }
 0x11b   : > { %v731_v26 = vpop.trf.xlu0 }
 0x11c   : > { %v747_v27 = vsel %vm710_vm2, %v731_v26, -inf }
 0x11d   : > { %748 = vmax.xlane.f32.xlu1 %v747_v27 }
 0x11f   : > { %v732_v28 = vpop.trf.xlu0 }
 0x120   : > { %v750_v29 = vsel %vm710_vm2, %v732_v28, -inf }
 0x121   : > { %751 = vmax.xlane.f32.xlu1 %v750_v29 }
 0x125   : > { %564 = vmax.xlane.f32.xlu1 %v563_v30 }
 0x129   : > { %567 = vmax.xlane.f32.xlu1 %v566_v31 }
 0x12d   : > { %570 = vmax.xlane.f32.xlu1 %v569_v32 }
 0x131   : > { %573 = vmax.xlane.f32.xlu1 %v572_v33 }
 0x1a6   : > { %v749_v37 = vpop.xlane.xlu1 %748 }
 0x1a7   : > { %v753_v38 = vsub.f32 %v731_v26, %v749_v37 }
 0x1a9   : > { %v1233_v39 = vclamps-f32 %v753_v38, 50000.0 }
 0x1aa   : > { %v752_v40 = vpop.xlane.xlu1 %751 }
 0x1ab   : > { %v754_v41 = vsub.f32 %v732_v28, %v752_v40  ;;  %v767_v42 = vsel %vm766_vm5, -3.4028235e+38, %v1233_v39  ;;  %v793_v28 = vld [vmem:[%s496_s20] sm:$0xff] }
 0x1ac   : > { %v769_v43 = vsel %vm710_vm2, %v767_v42, -inf }
 0x1ad   : > { %v1234_v44 = vclamps-f32 %v754_v41, 50000.0  ;;  %770 = vmax.xlane.f32.xlu1 %v769_v43 }
 0x1ae   : > { %v565_v45 = vpop.xlane.xlu1 %564 }
 0x1af   : > { %v575_v46 = vsub.f32 %v558_v17, %v565_v45  ;;  %v768_v47 = vsel %vm766_vm5, -3.4028235e+38, %v1234_v44 }
 0x1b0   : > { %v772_v48 = vsel %vm710_vm2, %v768_v47, -inf }
 0x1b1   : > { %v579_v49 = vmul.f32 1.442695, %v575_v46  ;;  %773 = vmax.xlane.f32.xlu1 %v772_v48 }
 0x1b2   : > { %v568_v50 = vpop.xlane.xlu1 %567 }
 0x1b3   : > { %1352 = vpow2.f32 %v579_v49  ;;  %v576_v51 = vsub.f32 %v559_v21, %v568_v50  ;;  %v795_v21 = vld [vmem:[%s496_s20 + $0x10] sm:$0xff] }
 0x1b4   : > { %1267 = vmatprep.subr.mxu1 %v795_v21 }
 0x1b5   : > { %v581_v52 = vmul.f32 1.442695, %v576_v51  ;;  %1268 = vmatpush3.msra.mxu1 %v795_v21 }
 0x1b6   : > { %v571_v53 = vpop.xlane.xlu1 %570 }
 0x1b7   : > { %1354 = vpow2.f32 %v581_v52  ;;  %v577_v54 = vsub.f32 %v560_v23, %v571_v53  ;;  %v794_v23 = vld [vmem:[%s496_s20 + $0x8] sm:$0xff]  ;;  %s514_s20 = scalar_lea.vmem %s1750_s8, %s1612_s27 }
 0x1b8   : > { %1269 = vmatprep.subr.mxu1 %v794_v23 }
 0x1b9   : > { %v583_v55 = vmul.f32 1.442695, %v577_v54  ;;  %1270 = vmatpush3.msra.mxu1 %v794_v23 }
 0x1ba   : > { %v574_v56 = vpop.xlane.xlu1 %573  ;;  %1271 = vmatprep.subr.mxu1 %v793_v28 }
 0x1bb   : > { %1356 = vpow2.f32 %v583_v55  ;;  %v578_v57 = vsub.f32 %v561_v25, %v574_v56  ;;  %1272 = vmatpush3.msra.mxu1 %v793_v28 }
 0x1bd   : > { %v585_v58 = vmul.f32 1.442695, %v578_v57 }
 0x1bf   : > { %1358 = vpow2.f32 %v585_v58 }
 0x1c0   : > { %v1353_v59 = vpop.eup %1352 }
 0x1c1   : > { %v587_v60 = vsel %vm562_vm3, %v1353_v59, 0.0 }
 0x1c2   : > { %588 = vadd.xlane.f32.xlu1 %v587_v60 }
 0x1c4   : > { %v1355_v61 = vpop.eup %1354 }
 0x1c5   : > { %v590_v62 = vsel %vm562_vm3, %v1355_v61, 0.0 }
 0x1c6   : > { %591 = vadd.xlane.f32.xlu1 %v590_v62 }
 0x1c8   : > { %v1357_v63 = vpop.eup %1356 }
 0x1c9   : > { %v593_v0 = vsel %vm562_vm3, %v1357_v63, 0.0 }
 0x1ca   : > { %594 = vadd.xlane.f32.xlu1 %v593_v0 }
 0x1cc   : > { %v1359_v1 = vpop.eup %1358 }
 0x1cd   : > { %v596_v2 = vsel %vm562_vm3, %v1359_v1, 0.0 }
 0x1ce   : > { %597 = vadd.xlane.f32.xlu0 %v596_v2 }
 0x236   : > { %v771_v5 = vpop.xlane.xlu1 %770 }
 0x237   : > { %v775_v6 = vsub.f32 %v767_v42, %v771_v5 }
 0x239   : > { %v777_v7 = vmul.f32 1.442695, %v775_v6 }
 0x23a   : > { %v774_v8 = vpop.xlane.xlu1 %773 }
 0x23b   : > { %1360 = vpow2.f32 %v777_v7  ;;  %v776_v9 = vsub.f32 %v768_v47, %v774_v8 }
 0x23d   : > { %v779_v10 = vmul.f32 1.442695, %v776_v9 }
 0x23f   : > { %1362 = vpow2.f32 %v779_v10 }
 0x248   : > { %v1361_v11 = vpop.eup %1360 }
 0x249   : > { %v781_v12 = vsel %vm710_vm2, %v1361_v11, 0.0 }
 0x24a   : > { %782 = vadd.xlane.f32.xlu1 %v781_v12 }
 0x24b   : > { %v589_v13 = vpop.xlane.xlu1 %588 }
 0x24c   : > { %v1363_v14 = vpop.eup %1362  ;;  %1364 = vrcp.f32 %v589_v13 }
 0x24d   : > { %v784_v15 = vsel %vm710_vm2, %v1363_v14, 0.0 }
 0x24e   : > { %785 = vadd.xlane.f32.xlu1 %v784_v15 }
 0x24f   : > { %v592_v16 = vpop.xlane.xlu1 %591 }
 0x250   : > { %1366 = vrcp.f32 %v592_v16 }
 0x253   : > { %v595_v17 = vpop.xlane.xlu1 %594 }
 0x254   : > { %1368 = vrcp.f32 %v595_v17 }
 0x257   : > { %v598_v18 = vpop.xlane.xlu0 %597 }
 0x258   : > { %1370 = vrcp.f32 %v598_v18 }
 0x259   : > { %v1365_v19 = vpop.eup %1364 }
 0x25a   : > { %v600_v22 = vmul.f32 %v1365_v19, %v1353_v59 }
 0x25c   : > { %607 = vst.msk [vmem:[%s505_s0] sm:$0xff] %vm562_vm3, %v600_v22  ;;  %1259 = vmatprep.mubr.msk.f32.mxu0 %vm562_vm3, %v600_v22 }
 0x25d   : > { %v1367_v24 = vpop.eup %1366 }
 0x25e   : > { %v602_v25 = vmul.f32 %v1367_v24, %v1355_v61 }
 0x260   : > { %608 = vst.msk [vmem:[%s505_s0 + $0x8] sm:$0xff] %vm562_vm3, %v602_v25  ;;  %1260 = vmatmul.mubr.msk.f32.vlgmr.msra.gmra.mxu0 %vm562_vm3, %v602_v25 }
 0x261   : > { %v1369_v26 = vpop.eup %1368 }
 0x262   : > { %v604_v27 = vmul.f32 %v1369_v26, %v1357_v63 }
 0x264   : > { %609 = vst.msk [vmem:[%s505_s0 + $0x10] sm:$0xff] %vm562_vm3, %v604_v27  ;;  %1262 = vmatprep.mubr.msk.f32.mxu0 %vm562_vm3, %v604_v27 }
 0x265   : > { %v1371_v29 = vpop.eup %1370 }
 0x266   : > { %v606_v30 = vmul.f32 %v1371_v29, %v1359_v1 }
 0x268   : > { %610 = vst.msk [vmem:[%s505_s0 + $0x18] sm:$0xff] %vm562_vm3, %v606_v30  ;;  %1263 = vmatmul.mubr.msk.f32.gmra.mxu0 %vm562_vm3, %v606_v30  ;;  %s1239_s0 = sshll.u32 %s1456_s15, 3  ;;  %s1471_s15 = smov [#allocation3]  }
 0x269   : > { %s923_s26 = sadd.s32 %s1239_s0, %s1238_s10  ;;  %s1380_s10 = sshll.u32 %s1471_s15, 4  ;;  %s1381_s10 = int_to_ptr.vmem [resolvable:$false] %s1380_s10 }
 0x26a   : > { %s1240_s27 = sshll.u32 %s923_s26, 7  ;;  %s1382_s0 = scalar_lea.vmem %s1381_s10, 512 }
 0x26b   : > { %s1682_s22 = scalar_lea.hbm %s1749_s7, %s1240_s27  ;;  %p1383_p4 = scmp.lt.s32.totalorder %s1676_s21, %s1381_s10 }
 0x26c   : > { %p1384_p5 = scmp.lt.s32.totalorder %s1382_s0, %s1376_s14 }
 0x26e   : > { %p1385_p6 = por %p1384_p5, %p1383_p4 }
 0x270   : > { %p1386_p7 = pnand %p1385_p6, %p1379_p2 }
 0x2d3   : > { %v783_v31 = vpop.xlane.xlu1 %782 }
 0x2d4   : > { %1372 = vrcp.f32 %v783_v31 }
 0x2d7   : > { %v786_v32 = vpop.xlane.xlu1 %785 }
 0x2d8   : > { %1374 = vrcp.f32 %v786_v32 }
 0x2e1   : > { %v1373_v33 = vpop.eup %1372 }
 0x2e2   : > { %v788_v34 = vmul.f32 %v1373_v33, %v1361_v11 }
 0x2e4   : > { %791 = vst.msk [vmem:[%s441_s17] sm:$0xff] %vm710_vm2, %v788_v34  ;;  %1273 = vmatprep.mubr.msk.f32.mxu1 %vm710_vm2, %v788_v34 }
 0x2e5   : > { %v1375_v35 = vpop.eup %1374 }
 0x2e6   : > { %v790_v36 = vmul.f32 %v1375_v35, %v1363_v14 }
 0x2e8   : > { %1274 = vmatmul.mubr.msk.f32.vlgmr.msra.gmra.mxu1 %vm710_vm2, %v790_v36  ;;  %792 = vst.msk [vmem:[%s441_s17 + $0x8] sm:$0xff] %vm710_vm2, %v790_v36  ;;  %s1684_s17 = scalar_lea.sflag [#allocation4], %s439_s25 }
 0x320   : > { %v1261_v37 = vpop.f32.mrf.mxu0 }
 0x321   : > { %712 = vst.msk [vmem:[%s514_s20 + $0x8] sm:$0xff] %vm710_vm2, %v1261_v37 }
 0x322   : > { %v691_v38 = vpop.f32.mrf.mxu0 }
 0x323   : > { %711 = vst.msk [vmem:[%s514_s20] sm:$0xff] %vm710_vm2, %v691_v38 }
 0x328   : > { %v1264_v39 = vpop.f32.mrf.mxu0 }
 0x329   : > { %714 = vst.msk [vmem:[%s514_s20 + $0x18] sm:$0xff] %vm710_vm2, %v1264_v39 }
 0x32a   : > { %v701_v40 = vpop.f32.mrf.mxu0 }
 0x32b   : > { %713 = vst.msk [vmem:[%s514_s20 + $0x10] sm:$0xff] %vm710_vm2, %v701_v40 }
 0x32c   : > { %1389 = shalt.err (!%p1386_p7)
}
 0x32d   : > { %s1390_s25 = scalar_lea.hbm %s1682_s22, 256  ;;  %s1394_s27 = scalar_lea.hbm %s1749_s7, 2048 }
 0x32e   : > { %p1391_p9 = scmp.ne.s32.totalorder %s1682_s22, %s1390_s25  ;;  %p1395_p12 = scmp.lt.s32.totalorder %s1682_s22, %s1749_s7 }
 0x32f   : > { %p1396_p13 = scmp.lt.s32.totalorder %s1394_s27, %s1390_s25 }
 0x330   : > { %p1392_p10 = pnand %p1391_p9, %p1578_p3 }
 0x331   : > { %p1397_p0 = por %p1396_p13, %p1395_p12 }
 0x332   : > { %p1393_p11 = pneg %p1392_p10 }
 0x334   : > { %p1398_p1 = pnand %p1397_p0, %p1393_p11 }
 0x336   : > { %1401 = shalt.err (!%p1398_p1)
}
 0x337   : > { %s1472_s14 = smov 128   ;;  %s1473_s15 = smov 8  }
 0x338   : > { %1276 = dma.vmem_to_hbm [thread:$0]  (%p1578_p3), %s1676_s21, 256, %s1682_s22, %s1684_s17, %s1472_s14, %s1472_s14, %s1473_s15  }
 0x339   : > { %s1761_s10 = sshll.u32 %s1636_s19, 3 }
 0x33a   : > { %s523_s26 = scalar_lea.vmem %s1751_s9, %s1761_s10 }
 0x3a8   : > { %v1275_v41 = vpop.f32.mrf.mxu1 }
 0x3a9   : > { %879 = vst.msk [vmem:[%s523_s26 + $0x8] sm:$0xff] %vm710_vm2, %v1275_v41 }
 0x3aa   : > { %v869_v42 = vpop.f32.mrf.mxu1 }
 0x3ab   : > { %878 = vst.msk [vmem:[%s523_s26] sm:$0xff] %vm710_vm2, %v869_v42 }
 0x3ac PF: > { %p1282_p2 = scmp.ge.s32.totalorder %s1468_s18, 2  ;;  %s959_s25 = sand.u32 1, %s1440_s11  }
 0x3ad   : > { %s960_s23 = scalar_lea.sflag [#allocation4], %s959_s25 }
 0x3ae   : > { %p1279_p4 = pnand %p1282_p2, %p1587_p8 }
 0x3b0   : > { %p1280_p3 = pneg %p1279_p4 }
 0x3b2   : > { %1435 = dma.done.wait (%p1280_p3), %s960_s23, 256  }
 0x3b3   : > { %1437 = vsyncadd (%p1280_p3), %s960_s23, 4294967040  ;;  %s25_s18 = sadd.s32 1, %s1468_s18   ;;  %s1762_s15 = sld [smem:[#allocation6_spill]] }
 0x3b4   : > { %p22_p5 = scmp.ge.s32.totalorder %s25_s18, 10   ;;  %s1763_s19 = sld [smem:[#allocation7_spill]] }
 0x3b5   : > { %s1764_s17 = sld [smem:[#allocation8_spill]]  ;;  %s1765_s11 = smov %s1444_s12 }
 0x3b6   : > { %s1766_s12 = smov %s1448_s13  ;;  %s1767_s13 = smov %s1596_s28 }
 0x3b7   : > { %s1768_s14 = smov %s1460_s16  ;;  %24 = sbr.rel (!%p22_p5) target bundleno = 8 (0x8), region = 127 }
 0x3ba   : > { %s1769_s16 = smov %s1763_s19 }
 0x3bc   :  { %989 = vsyncpa [#allocation4], 1 }
 0x3bd   :  { %991 = vsyncpa [#allocation4 + $0x1], 1 }

// kernel: grounded_audio_bi_mha.14
= control target key start
LH: loop header
LB: loop body
LE: loop exit
PB: predicated region body
PF: predicated region fallthrough
CT: control target
= control target key end

     0   :  { %s411_s0 = inlined_call_operand.vmem [shape: f32[64,128], index: 0, kind: input, shape index: {}]   ;;  %s412_s1 = inlined_call_operand.vmem [shape: f32[128,64], index: 1, kind: input, shape index: {}]   ;;  %s413_s2 = inlined_call_operand.vmem [shape: f32[1,64], index: 2, kind: input, shape index: {}]   ;;  %s414_s3 = inlined_call_operand.hbm [shape: f32[64,64], index: 3, kind: output, shape index: {}]  }
   0x1   :  { %v38_v0 = vld [vmem:[%s412_s1 + $0x78] sm:$0xff]  ;;  %v37_v1 = vld [vmem:[%s412_s1 + $0x70] sm:$0xff]  ;;  %v36_v2 = vld [vmem:[%s412_s1 + $0x68] sm:$0xff] }
   0x2   :  { %201 = vmatprep.subr.mxu0 %v38_v0  ;;  %245 = vmatprep.subr.mxu1 %v38_v0  ;;  %v35_v3 = vld [vmem:[%s412_s1 + $0x60] sm:$0xff]  ;;  %v34_v4 = vld [vmem:[%s412_s1 + $0x58] sm:$0xff]  ;;  %v33_v5 = vld [vmem:[%s412_s1 + $0x50] sm:$0xff] }
   0x3   :  { %202 = vmatpush3.msra.mxu0 %v38_v0  ;;  %261 = vmatpush3.msra.mxu1 %v38_v0 }
   0x4   :  { %203 = vmatprep.subr.mxu0 %v37_v1  ;;  %246 = vmatprep.subr.mxu1 %v37_v1 }
   0x5   :  { %204 = vmatpush3.msra.mxu0 %v37_v1  ;;  %262 = vmatpush3.msra.mxu1 %v37_v1 }
   0x6   :  { %205 = vmatprep.subr.mxu0 %v36_v2  ;;  %247 = vmatprep.subr.mxu1 %v36_v2 }
   0x7   :  { %206 = vmatpush3.msra.mxu0 %v36_v2  ;;  %263 = vmatpush3.msra.mxu1 %v36_v2 }
   0x8   :  { %207 = vmatprep.subr.mxu0 %v35_v3  ;;  %248 = vmatprep.subr.mxu1 %v35_v3 }
   0x9   :  { %208 = vmatpush3.msra.mxu0 %v35_v3  ;;  %264 = vmatpush3.msra.mxu1 %v35_v3 }
   0xa   :  { %8 = vsyncpa [#allocation3], 0  ;;  %209 = vmatprep.subr.mxu0 %v34_v4  ;;  %249 = vmatprep.subr.mxu1 %v34_v4  ;;  %v32_v6 = vld [vmem:[%s412_s1 + $0x48] sm:$0xff]  ;;  %v31_v7 = vld [vmem:[%s412_s1 + $0x40] sm:$0xff]  ;;  %vm151_vm0 = vcmask 523264  }
   0xb   :  { %210 = vmatpush3.msra.mxu0 %v34_v4  ;;  %265 = vmatpush3.msra.mxu1 %v34_v4  ;;  %v30_v8 = vld [vmem:[%s412_s1 + $0x38] sm:$0xff]  ;;  %v29_v9 = vld [vmem:[%s412_s1 + $0x30] sm:$0xff]  ;;  %v28_v10 = vld [vmem:[%s412_s1 + $0x28] sm:$0xff] }
   0xc   :  { %211 = vmatprep.subr.mxu0 %v33_v5  ;;  %250 = vmatprep.subr.mxu1 %v33_v5  ;;  %v27_v11 = vld [vmem:[%s412_s1 + $0x20] sm:$0xff]  ;;  %v26_v12 = vld [vmem:[%s412_s1 + $0x18] sm:$0xff]  ;;  %v25_v13 = vld [vmem:[%s412_s1 + $0x10] sm:$0xff] }
   0xd   :  { %212 = vmatpush3.msra.mxu0 %v33_v5  ;;  %266 = vmatpush3.msra.mxu1 %v33_v5  ;;  %v24_v14 = vld [vmem:[%s412_s1 + $0x8] sm:$0xff]  ;;  %v23_v15 = vld [vmem:[%s412_s1] sm:$0xff]  ;;  %v17_v20 = vld [vmem:[%s411_s0 + $0x10] sm:$0xff] }
   0xe   :  { %213 = vmatprep.subr.mxu0 %v32_v6  ;;  %251 = vmatprep.subr.mxu1 %v32_v6  ;;  %v15_v16 = vld [vmem:[%s411_s0] sm:$0xff]  ;;  %v16_v18 = vld [vmem:[%s411_s0 + $0x8] sm:$0xff]  ;;  %v21_v21 = vld [vmem:[%s411_s0 + $0x30] sm:$0xff] }
   0xf   :  { %214 = vmatpush3.msra.mxu0 %v32_v6  ;;  %267 = vmatpush3.msra.mxu1 %v32_v6  ;;  %v19_v17 = vld [vmem:[%s411_s0 + $0x20] sm:$0xff]  ;;  %v20_v19 = vld [vmem:[%s411_s0 + $0x28] sm:$0xff]  ;;  %v18_v22 = vld [vmem:[%s411_s0 + $0x18] sm:$0xff] }
  0x10   :  { %215 = vmatprep.subr.mxu0 %v31_v7  ;;  %252 = vmatprep.subr.mxu1 %v31_v7  ;;  %v22_v23 = vld [vmem:[%s411_s0 + $0x38] sm:$0xff]  ;;  %v176_v24 = vld [vmem:[%s413_s2] ss:$0 sm:$0xff]  ;;  %s302_s0 = smov [#allocation2]  }
  0x11   :  { %216 = vmatpush3.msra.mxu0 %v31_v7  ;;  %268 = vmatpush3.msra.mxu1 %v31_v7  ;;  %s165_s7 = sshll.u32 %s302_s0, 4  ;;  %s166_s7 = int_to_ptr.vmem [resolvable:$true] %s165_s7 }
  0x12   :  { %217 = vmatprep.subr.mxu0 %v30_v8  ;;  %253 = vmatprep.subr.mxu1 %v30_v8  ;;  %s280_s2 = scalar_lea.vmem %s166_s7, 1024  ;;  %p285_p1 = scmp.lt.s32.totalorder %s166_s7, %s166_s7 }
  0x13   :  { %218 = vmatpush3.msra.mxu0 %v30_v8  ;;  %269 = vmatpush3.msra.mxu1 %v30_v8  ;;  %p281_p0 = scmp.ne.s32.totalorder %s166_s7, %s280_s2  ;;  %p286_p2 = scmp.lt.s32.totalorder %s280_s2, %s280_s2 }
  0x14   :  { %219 = vmatprep.subr.mxu0 %v29_v9  ;;  %254 = vmatprep.subr.mxu1 %v29_v9 }
  0x15   :  { %220 = vmatpush3.msra.mxu0 %v29_v9  ;;  %270 = vmatpush3.msra.mxu1 %v29_v9  ;;  %p287_p3 = por %p286_p2, %p285_p1 }
  0x16   :  { %221 = vmatprep.subr.mxu0 %v28_v10  ;;  %255 = vmatprep.subr.mxu1 %v28_v10 }
  0x17   :  { %222 = vmatpush3.msra.mxu0 %v28_v10  ;;  %271 = vmatpush3.msra.mxu1 %v28_v10  ;;  %p288_p4 = pnand %p287_p3, %p281_p0 }
  0x18   :  { %223 = vmatprep.subr.mxu0 %v27_v11  ;;  %256 = vmatprep.subr.mxu1 %v27_v11 }
  0x19   :  { %224 = vmatpush3.msra.mxu0 %v27_v11  ;;  %272 = vmatpush3.msra.mxu1 %v27_v11 }
  0x1a   :  { %225 = vmatprep.subr.mxu0 %v26_v12  ;;  %257 = vmatprep.subr.mxu1 %v26_v12 }
  0x1b   :  { %226 = vmatpush3.msra.mxu0 %v26_v12  ;;  %273 = vmatpush3.msra.mxu1 %v26_v12 }
  0x1c   :  { %227 = vmatprep.subr.mxu0 %v25_v13  ;;  %258 = vmatprep.subr.mxu1 %v25_v13 }
  0x1d   :  { %228 = vmatpush3.msra.mxu0 %v25_v13  ;;  %274 = vmatpush3.msra.mxu1 %v25_v13 }
  0x1e   :  { %229 = vmatprep.subr.mxu0 %v24_v14  ;;  %259 = vmatprep.subr.mxu1 %v24_v14 }
  0x1f   :  { %230 = vmatpush3.msra.mxu0 %v24_v14  ;;  %275 = vmatpush3.msra.mxu1 %v24_v14 }
  0x20   :  { %231 = vmatprep.subr.mxu0 %v23_v15  ;;  %260 = vmatprep.subr.mxu1 %v23_v15 }
  0x21   :  { %232 = vmatpush3.msra.mxu0 %v23_v15  ;;  %276 = vmatpush3.msra.mxu1 %v23_v15 }
  0x22   :  { %233 = vmatprep.mubr.f32.mxu0 %v15_v16  ;;  %239 = vmatprep.mubr.f32.mxu1 %v19_v17 }
  0x23   :  { %234 = vmatmul.mubr.f32.vlgmr.msra.gmra.mxu0 %v16_v18  ;;  %240 = vmatmul.mubr.f32.vlgmr.msra.gmra.mxu1 %v20_v19 }
  0x24   :  { %236 = vmatprep.mubr.f32.mxu0 %v17_v20  ;;  %242 = vmatprep.mubr.f32.mxu1 %v21_v21 }
  0x27   :  { %237 = vmatmul.mubr.f32.gmra.mxu0 %v18_v22  ;;  %243 = vmatmul.mubr.f32.gmra.mxu1 %v22_v23 }
  0xe3   :  { %v235_v25 = vpop.f32.mrf.mxu0  ;;  %v241_v26 = vpop.f32.mrf.mxu1 }
  0xe4   :  { %v118_v27 = vadd.f32 %v235_v25, %v176_v24  ;;  %v138_v28 = vadd.f32 %v241_v26, %v176_v24 }
  0xe5   :  { %v112_v29 = vpop.f32.mrf.mxu0  ;;  %v132_v30 = vpop.f32.mrf.mxu1 }
  0xe6   :  { %153 = vst.msk [vmem:[#allocation2 + $0x8] sm:$0xff] %vm151_vm0, %v118_v27  ;;  %157 = vst.msk [vmem:[#allocation2 + $0x28] sm:$0xff] %vm151_vm0, %v138_v28  ;;  %v113_v31 = vadd.f32 %v176_v24, %v112_v29  ;;  %v133_v32 = vadd.f32 %v176_v24, %v132_v30 }
  0xe7   :  { %v238_v33 = vpop.f32.mrf.mxu0  ;;  %v244_v34 = vpop.f32.mrf.mxu1 }
  0xe8   :  { %152 = vst.msk [vmem:[#allocation2] sm:$0xff] %vm151_vm0, %v113_v31  ;;  %156 = vst.msk [vmem:[#allocation2 + $0x20] sm:$0xff] %vm151_vm0, %v133_v32  ;;  %v128_v35 = vadd.f32 %v238_v33, %v176_v24  ;;  %v148_v36 = vadd.f32 %v244_v34, %v176_v24 }
  0xe9   :  { %v122_v37 = vpop.f32.mrf.mxu0  ;;  %v142_v38 = vpop.f32.mrf.mxu1 }
  0xea   :  { %155 = vst.msk [vmem:[#allocation2 + $0x18] sm:$0xff] %vm151_vm0, %v128_v35  ;;  %159 = vst.msk [vmem:[#allocation2 + $0x38] sm:$0xff] %vm151_vm0, %v148_v36  ;;  %v123_v39 = vadd.f32 %v176_v24, %v122_v37  ;;  %v143_v40 = vadd.f32 %v176_v24, %v142_v38 }
  0xec   :  { %154 = vst.msk [vmem:[#allocation2 + $0x10] sm:$0xff] %vm151_vm0, %v123_v39  ;;  %158 = vst.msk [vmem:[#allocation2 + $0x30] sm:$0xff] %vm151_vm0, %v143_v40 }
  0xed   :  { %291 = shalt.err (!%p288_p4)
}
  0xee   :  { %s303_s8 = smov 128   ;;  %s304_s9 = smov 8  }
  0xef   :  { %171 = dma.vmem_to_hbm [thread:$0]  %s166_s7, 1024, %s414_s3, [#allocation3], %s303_s8, %s303_s8, %s304_s9  }
  0xf0   :  { %300 = dma.done.wait [#allocation3], 1024  }
  0xf1   :  { %301 = vsyncadd [#allocation3], 4294966272 }
  0xf2   :  { %175 = vsyncpa [#allocation3], 1 }

// kernel: grounded_audio_bi_mha.15
= control target key start
LH: loop header
LB: loop body
LE: loop exit
PB: predicated region body
PF: predicated region fallthrough
CT: control target
= control target key end

     0   :  { %s353_s0 = inlined_call_operand.vmem [shape: f32[32,128], index: 0, kind: input, shape index: {}]   ;;  %s354_s1 = inlined_call_operand.vmem [shape: f32[128,64], index: 1, kind: input, shape index: {}]   ;;  %s355_s2 = inlined_call_operand.vmem [shape: f32[1,64], index: 2, kind: input, shape index: {}]   ;;  %s356_s3 = inlined_call_operand.hbm [shape: f32[32,64], index: 3, kind: output, shape index: {}]  }
   0x1   :  { %v34_v0 = vld [vmem:[%s354_s1 + $0x78] sm:$0xff]  ;;  %v33_v1 = vld [vmem:[%s354_s1 + $0x70] sm:$0xff]  ;;  %v32_v2 = vld [vmem:[%s354_s1 + $0x68] sm:$0xff] }
   0x2   :  { %169 = vmatprep.subr.mxu0 %v34_v0  ;;  %207 = vmatprep.subr.mxu1 %v34_v0  ;;  %v31_v3 = vld [vmem:[%s354_s1 + $0x60] sm:$0xff]  ;;  %v30_v4 = vld [vmem:[%s354_s1 + $0x58] sm:$0xff] }
   0x3   :  { %170 = vmatpush3.msra.mxu0 %v34_v0  ;;  %223 = vmatpush3.msra.mxu1 %v34_v0 }
   0x4   :  { %171 = vmatprep.subr.mxu0 %v33_v1  ;;  %208 = vmatprep.subr.mxu1 %v33_v1 }
   0x5   :  { %172 = vmatpush3.msra.mxu0 %v33_v1  ;;  %224 = vmatpush3.msra.mxu1 %v33_v1 }
   0x6   :  { %173 = vmatprep.subr.mxu0 %v32_v2  ;;  %209 = vmatprep.subr.mxu1 %v32_v2 }
   0x7   :  { %174 = vmatpush3.msra.mxu0 %v32_v2  ;;  %225 = vmatpush3.msra.mxu1 %v32_v2 }
   0x8   :  { %8 = vsyncpa [#allocation3], 0  ;;  %175 = vmatprep.subr.mxu0 %v31_v3  ;;  %210 = vmatprep.subr.mxu1 %v31_v3  ;;  %v29_v5 = vld [vmem:[%s354_s1 + $0x50] sm:$0xff]  ;;  %v28_v6 = vld [vmem:[%s354_s1 + $0x48] sm:$0xff]  ;;  %s264_s26 = smov [#allocation2]   ;;  %vm127_vm0 = vcmask 523264  }
   0x9   :  { %176 = vmatpush3.msra.mxu0 %v31_v3  ;;  %226 = vmatpush3.msra.mxu1 %v31_v3  ;;  %v27_v7 = vld [vmem:[%s354_s1 + $0x40] sm:$0xff]  ;;  %v26_v8 = vld [vmem:[%s354_s1 + $0x38] sm:$0xff]  ;;  %v25_v9 = vld [vmem:[%s354_s1 + $0x30] sm:$0xff]  ;;  %s137_s27 = sshll.u32 %s264_s26, 4  ;;  %s138_s27 = int_to_ptr.vmem [resolvable:$true] %s137_s27 }
   0xa   :  { %177 = vmatprep.subr.mxu0 %v30_v4  ;;  %211 = vmatprep.subr.mxu1 %v30_v4  ;;  %v24_v10 = vld [vmem:[%s354_s1 + $0x28] sm:$0xff]  ;;  %v23_v11 = vld [vmem:[%s354_s1 + $0x20] sm:$0xff]  ;;  %v22_v12 = vld [vmem:[%s354_s1 + $0x18] sm:$0xff]  ;;  %p247_p1 = scmp.lt.s32.totalorder %s138_s27, %s138_s27 }
   0xb   :  { %178 = vmatpush3.msra.mxu0 %v30_v4  ;;  %227 = vmatpush3.msra.mxu1 %v30_v4  ;;  %v21_v13 = vld [vmem:[%s354_s1 + $0x10] sm:$0xff]  ;;  %v20_v14 = vld [vmem:[%s354_s1 + $0x8] sm:$0xff]  ;;  %v19_v15 = vld [vmem:[%s354_s1] sm:$0xff] }
   0xc   :  { %179 = vmatprep.subr.mxu0 %v29_v5  ;;  %212 = vmatprep.subr.mxu1 %v29_v5  ;;  %v15_v16 = vld [vmem:[%s353_s0] sm:$0xff]  ;;  %v17_v17 = vld [vmem:[%s353_s0 + $0x10] sm:$0xff]  ;;  %v16_v18 = vld [vmem:[%s353_s0 + $0x8] sm:$0xff] }
   0xd   :  { %180 = vmatpush3.msra.mxu0 %v29_v5  ;;  %228 = vmatpush3.msra.mxu1 %v29_v5  ;;  %v18_v19 = vld [vmem:[%s353_s0 + $0x18] sm:$0xff]  ;;  %v148_v20 = vld [vmem:[%s355_s2] ss:$0 sm:$0xff]  ;;  %s242_s0 = scalar_lea.vmem %s138_s27, 512 }
   0xe   :  { %181 = vmatprep.subr.mxu0 %v28_v6  ;;  %213 = vmatprep.subr.mxu1 %v28_v6  ;;  %p243_p0 = scmp.ne.s32.totalorder %s138_s27, %s242_s0  ;;  %p248_p2 = scmp.lt.s32.totalorder %s242_s0, %s242_s0 }
   0xf   :  { %182 = vmatpush3.msra.mxu0 %v28_v6  ;;  %229 = vmatpush3.msra.mxu1 %v28_v6 }
  0x10   :  { %183 = vmatprep.subr.mxu0 %v27_v7  ;;  %214 = vmatprep.subr.mxu1 %v27_v7  ;;  %p249_p3 = por %p248_p2, %p247_p1 }
  0x11   :  { %184 = vmatpush3.msra.mxu0 %v27_v7  ;;  %230 = vmatpush3.msra.mxu1 %v27_v7 }
  0x12   :  { %185 = vmatprep.subr.mxu0 %v26_v8  ;;  %215 = vmatprep.subr.mxu1 %v26_v8  ;;  %p250_p4 = pnand %p249_p3, %p243_p0 }
  0x13   :  { %186 = vmatpush3.msra.mxu0 %v26_v8  ;;  %231 = vmatpush3.msra.mxu1 %v26_v8 }
  0x14   :  { %187 = vmatprep.subr.mxu0 %v25_v9  ;;  %216 = vmatprep.subr.mxu1 %v25_v9 }
  0x15   :  { %188 = vmatpush3.msra.mxu0 %v25_v9  ;;  %232 = vmatpush3.msra.mxu1 %v25_v9 }
  0x16   :  { %189 = vmatprep.subr.mxu0 %v24_v10  ;;  %217 = vmatprep.subr.mxu1 %v24_v10 }
  0x17   :  { %190 = vmatpush3.msra.mxu0 %v24_v10  ;;  %233 = vmatpush3.msra.mxu1 %v24_v10 }
  0x18   :  { %191 = vmatprep.subr.mxu0 %v23_v11  ;;  %218 = vmatprep.subr.mxu1 %v23_v11 }
  0x19   :  { %192 = vmatpush3.msra.mxu0 %v23_v11  ;;  %234 = vmatpush3.msra.mxu1 %v23_v11 }
  0x1a   :  { %193 = vmatprep.subr.mxu0 %v22_v12  ;;  %219 = vmatprep.subr.mxu1 %v22_v12 }
  0x1b   :  { %194 = vmatpush3.msra.mxu0 %v22_v12  ;;  %235 = vmatpush3.msra.mxu1 %v22_v12 }
  0x1c   :  { %195 = vmatprep.subr.mxu0 %v21_v13  ;;  %220 = vmatprep.subr.mxu1 %v21_v13 }
  0x1d   :  { %196 = vmatpush3.msra.mxu0 %v21_v13  ;;  %236 = vmatpush3.msra.mxu1 %v21_v13 }
  0x1e   :  { %197 = vmatprep.subr.mxu0 %v20_v14  ;;  %221 = vmatprep.subr.mxu1 %v20_v14 }
  0x1f   :  { %198 = vmatpush3.msra.mxu0 %v20_v14  ;;  %237 = vmatpush3.msra.mxu1 %v20_v14 }
  0x20   :  { %199 = vmatprep.subr.mxu0 %v19_v15  ;;  %222 = vmatprep.subr.mxu1 %v19_v15 }
  0x21   :  { %200 = vmatpush3.msra.mxu0 %v19_v15  ;;  %238 = vmatpush3.msra.mxu1 %v19_v15 }
  0x22   :  { %201 = vmatprep.mubr.f32.mxu0 %v15_v16  ;;  %204 = vmatprep.mubr.f32.mxu1 %v17_v17 }
  0x23   :  { %202 = vmatmul.mubr.f32.vlgmr.msra.gmra.mxu0 %v16_v18  ;;  %205 = vmatmul.mubr.f32.vlgmr.msra.gmra.mxu1 %v18_v19 }
  0xe3   :  { %v203_v21 = vpop.f32.mrf.mxu0  ;;  %v206_v22 = vpop.f32.mrf.mxu1 }
  0xe4   :  { %v114_v23 = vadd.f32 %v203_v21, %v148_v20  ;;  %v124_v24 = vadd.f32 %v206_v22, %v148_v20 }
  0xe5   :  { %v108_v25 = vpop.f32.mrf.mxu0  ;;  %v118_v26 = vpop.f32.mrf.mxu1 }
  0xe6   :  { %129 = vst.msk [vmem:[#allocation2 + $0x8] sm:$0xff] %vm127_vm0, %v114_v23  ;;  %131 = vst.msk [vmem:[#allocation2 + $0x18] sm:$0xff] %vm127_vm0, %v124_v24  ;;  %v109_v27 = vadd.f32 %v148_v20, %v108_v25  ;;  %v119_v28 = vadd.f32 %v148_v20, %v118_v26 }
  0xe8   :  { %128 = vst.msk [vmem:[#allocation2] sm:$0xff] %vm127_vm0, %v109_v27  ;;  %130 = vst.msk [vmem:[#allocation2 + $0x10] sm:$0xff] %vm127_vm0, %v119_v28 }
  0xe9   :  { %253 = shalt.err (!%p250_p4)
}
  0xea   :  { %s265_s2 = smov 128   ;;  %s266_s28 = smov 8  }
  0xeb   :  { %143 = dma.vmem_to_hbm [thread:$0]  %s138_s27, 512, %s356_s3, [#allocation3], %s265_s2, %s265_s2, %s266_s28  }
  0xec   :  { %262 = dma.done.wait [#allocation3], 512  }
  0xed   :  { %263 = vsyncadd [#allocation3], 4294966784 }
  0xee   :  { %147 = vsyncpa [#allocation3], 1 }

</bundles_post_ra>
